<compile_context>
chip_gen: v7x
topology: tpu7x:2x2x1
jax: 0.10.0
libtpu: 0.0.40
codegen_flags: <defaults>
</compile_context>

<pallas_src>
import functools

import jax
import jax.numpy as jnp
from jax.experimental import pallas as pl
from jax.experimental.pallas import tpu as pltpu

# Safe on every generation (v5e/v6e: 128 MiB physical, v7x: 64 MiB physical).
# On v5e/v6e this could be raised toward 64 MiB for even larger tiles; kept at
# 32 MiB so the same binary is v7x-safe.
_VMEM_LIMIT_BYTES = 32 * 1024 * 1024


# ---------------------------------------------------------------------------
# helpers
# ---------------------------------------------------------------------------
def _erf_f32(x):
    """float32 erf via the rational polynomial XLA uses (ErfImpl32)."""
    x = jnp.clip(x, -4.0, 4.0)
    x2 = x * x
    alpha = jnp.float32(-2.72614225801306e-10)
    for c in (2.77068142495902e-08, -2.10102402082508e-06, -5.69250639462346e-05,
              -7.34990630326855e-04, -2.95459980854025e-03, -1.60960333262415e-02):
        alpha = alpha * x2 + jnp.float32(c)
    beta = jnp.float32(-1.45660718464996e-05)
    for c in (-2.13374055278905e-04, -1.68282697438203e-03, -7.37332916720468e-03,
              -1.42647390514189e-02):
        beta = beta * x2 + jnp.float32(c)
    # divide -> EUP reciprocal (keeps the VPU free in the GELU epilogue)
    return x * alpha * pl.reciprocal(beta, approx=True)


def _gelu_exact(y):
    return 0.5 * y * (1.0 + _erf_f32(y * jnp.float32(0.7071067811865476)))


def _m_tile(M, cap=512):
    return M if M <= cap else cap          # cap % 8 == 0


def _n_tile(N, cap=512):
    return N if N <= cap else cap          # cap % 128 == 0


def _k_tile(K, cap=1024):
    """Tile that exactly divides K (K padding would corrupt the reduction)."""
    if K <= cap:
        return K
    for t in (1024, 768, 512, 384, 256, 128):
        if t <= cap and K % t == 0:
            return t
    return K  # fall back: no K tiling


def _ln_f32(x, g, b):
    """Row LayerNorm in f32; g/b are (1, K)."""
    mu = jnp.mean(x, axis=-1, keepdims=True)
    var = jnp.mean(jnp.square(x - mu), axis=-1, keepdims=True)
    xn = (x - mu) * jax.lax.rsqrt(var + jnp.float32(1e-5))
    return xn * g + b


# ---------------------------------------------------------------------------
# Pallas kernels
# ---------------------------------------------------------------------------
def _linear_kernel(*refs, gelu, has_residual):
    # y = x @ W^T + b  (+ residual) (+ GELU); W is bf16 in PyTorch (N, K) layout.
    if has_residual:
        x_ref, w_ref, b_ref, r_ref, o_ref, acc_ref = refs
    else:
        x_ref, w_ref, b_ref, o_ref, acc_ref = refs
        r_ref = None

    k = pl.program_id(2)

    @pl.when(k == 0)
    def _():
        acc_ref[...] = jnp.zeros_like(acc_ref)

    acc_ref[...] += jax.lax.dot_general(
        x_ref[...].astype(jnp.bfloat16), w_ref[...],
        (((1,), (1,)), ((), ())), preferred_element_type=jnp.float32)

    @pl.when(k == pl.num_programs(2) - 1)
    def _():
        y = acc_ref[...] + b_ref[...]
        if gelu:
            y = _gelu_exact(y)
        if r_ref is not None:
            y = y + r_ref[...]
        o_ref[...] = y.astype(o_ref.dtype)


def _ln_linear_kernel(x_ref, g_ref, bln_ref, w_ref, b_ref, o_ref, *, gelu):
    # y = LayerNorm(x) @ W^T + b (+ GELU); full N & K per step, so the LN
    # reductions run exactly once per row tile.
    x = x_ref[...].astype(jnp.float32)
    xn = _ln_f32(x, g_ref[...], bln_ref[...])
    y = jax.lax.dot_general(
        xn.astype(jnp.bfloat16), w_ref[...], (((1,), (1,)), ((), ())),
        preferred_element_type=jnp.float32) + b_ref[...]
    if gelu:
        y = _gelu_exact(y)
    o_ref[...] = y.astype(o_ref.dtype)


def _mlp_block_kernel(x_ref, g_ref, bln_ref, w1_ref, b1_ref, w2_ref, b2_ref,
                      o_ref):
    # Fused MLP block: out = x + fc2(GELU(fc1(LayerNorm(x)))).
    # The (tm, mlp_dim) hidden activation lives only in VMEM.
    x = x_ref[...].astype(jnp.float32)
    xn = _ln_f32(x, g_ref[...], bln_ref[...])
    h = jax.lax.dot_general(
        xn.astype(jnp.bfloat16), w1_ref[...], (((1,), (1,)), ((), ())),
        preferred_element_type=jnp.float32) + b1_ref[...]
    h = _gelu_exact(h)
    y = jax.lax.dot_general(
        h.astype(jnp.bfloat16), w2_ref[...], (((1,), (1,)), ((), ())),
        preferred_element_type=jnp.float32) + b2_ref[...]
    o_ref[...] = (y + x).astype(o_ref.dtype)


def _mha_write_heads(q_slab, k_slab, v_slab, o_ref, *, heads, scale):
    """Per-head attention; each head result is stored directly (no concat)."""
    Dh = q_slab.shape[-1] // heads
    for h in range(heads):
        sl = slice(h * Dh, (h + 1) * Dh)
        q = (q_slab[:, sl] * jnp.float32(scale)).astype(jnp.bfloat16)
        k = k_slab[:, sl].astype(jnp.bfloat16)
        v = v_slab[:, sl].astype(jnp.bfloat16)
        s = jax.lax.dot_general(q, k, (((1,), (1,)), ((), ())),
                                preferred_element_type=jnp.float32)
        s = s - jnp.max(s, axis=-1, keepdims=True)
        p = jnp.exp(s)
        inv = pl.reciprocal(jnp.sum(p, axis=-1, keepdims=True), approx=True)
        o = jnp.dot(p.astype(jnp.bfloat16), v,
                    preferred_element_type=jnp.float32) * inv
        o_ref[0, :, sl] = o.astype(o_ref.dtype)


def _attention_group_kernel(q_ref, k_ref, v_ref, o_ref, *, heads, scale):
    # One (batch, head-group) per grid step; q/k/v blocks are 128-lane aligned.
    _mha_write_heads(q_ref[0], k_ref[0], v_ref[0], o_ref,
                     heads=heads, scale=scale)


def _attention_slab_kernel(qkv_ref, o_ref, *, num_heads, scale):
    # Fallback (small / unaligned head dims): whole (S, 3E) slab per batch.
    slab = qkv_ref[0].astype(jnp.float32)
    E = slab.shape[-1] // 3
    _mha_write_heads(slab[:, :E], slab[:, E:2 * E], slab[:, 2 * E:], o_ref,
                     heads=num_heads, scale=scale)


# ---------------------------------------------------------------------------
# Pallas wrappers
# ---------------------------------------------------------------------------
def pallas_linear(x2d, w_bf16, b, residual=None, gelu=False):
    """x2d: (M, K) f32; w_bf16: PyTorch layout (N, K) bf16; b: (N,) -> (M, N) f32."""
    M, K = x2d.shape
    N = w_bf16.shape[0]
    tm, tn, tk = _m_tile(M), _n_tile(N), _k_tile(K)
    grid = (pl.cdiv(M, tm), pl.cdiv(N, tn), max(K // tk, 1))

    in_specs = [
        pl.BlockSpec((tm, tk), lambda i, j, k: (i, k)),
        pl.BlockSpec((tn, tk), lambda i, j, k: (j, k)),
        pl.BlockSpec((1, tn), lambda i, j, k: (0, j)),
    ]
    args = [x2d, w_bf16, b.reshape(1, N)]
    if residual is not None:
        in_specs.append(pl.BlockSpec((tm, tn), lambda i, j, k: (i, j)))
        args.append(residual)

    bytes_accessed = (4 * M * K + 2 * N * K + 4 * M * N + 4 * N
                      + (4 * M * N if residual is not None else 0))
    return pl.pallas_call(
        functools.partial(_linear_kernel, gelu=gelu,
                          has_residual=residual is not None),
        out_shape=jax.ShapeDtypeStruct((M, N), jnp.float32),
        grid=grid,
        in_specs=in_specs,
        out_specs=pl.BlockSpec((tm, tn), lambda i, j, k: (i, j)),
        scratch_shapes=[pltpu.VMEM((tm, tn), jnp.float32)],
        compiler_params=pltpu.CompilerParams(
            dimension_semantics=("parallel", "parallel", "arbitrary"),
            vmem_limit_bytes=_VMEM_LIMIT_BYTES),
        cost_estimate=pl.CostEstimate(flops=2 * M * N * K, transcendentals=0,
                                      bytes_accessed=bytes_accessed),
    )(*args)


def pallas_ln_linear(x2d, gamma, beta, w_bf16, b, gelu=False):
    """LayerNorm(x) fused into the following linear; grid over M tiles only,
    full (N, K) bf16 weight resident -> LN computed once per row tile."""
    M, K = x2d.shape
    N = w_bf16.shape[0]
    tm = _m_tile(M)
    grid = (pl.cdiv(M, tm),)

    bytes_accessed = 4 * M * K + 2 * N * K + 4 * M * N + 4 * (2 * K + N)
    return pl.pallas_call(
        functools.partial(_ln_linear_kernel, gelu=gelu),
        out_shape=jax.ShapeDtypeStruct((M, N), jnp.float32),
        grid=grid,
        in_specs=[
            pl.BlockSpec((tm, K), lambda i: (i, 0)),
            pl.BlockSpec((1, K), lambda i: (0, 0)),
            pl.BlockSpec((1, K), lambda i: (0, 0)),
            pl.BlockSpec((N, K), lambda i: (0, 0)),
            pl.BlockSpec((1, N), lambda i: (0, 0)),
        ],
        out_specs=pl.BlockSpec((tm, N), lambda i: (i, 0)),
        compiler_params=pltpu.CompilerParams(
            dimension_semantics=("parallel",),
            vmem_limit_bytes=_VMEM_LIMIT_BYTES),
        cost_estimate=pl.CostEstimate(flops=2 * M * N * K + 10 * M * K,
                                      transcendentals=M,
                                      bytes_accessed=bytes_accessed),
    )(x2d, gamma.reshape(1, K), beta.reshape(1, K), w_bf16, b.reshape(1, N))


def pallas_mlp_block(x2d, gamma, beta, w1_bf16, b1, w2_bf16, b2):
    """Fused LN -> fc1 -> GELU -> fc2 -> +residual.  The (tm, mlp) hidden never
    leaves VMEM.  tm capped at 256 so bf16 fc1+fc2 resident weights + hidden fit
    the 32 MiB scoped VMEM on every generation (incl. v7x's 64 MiB per TC)."""
    M, E = x2d.shape
    mlp = w1_bf16.shape[0]
    tm = _m_tile(M, cap=256)
    grid = (pl.cdiv(M, tm),)

    bytes_accessed = 4 * M * E + 2 * 2 * mlp * E + 4 * M * E + 4 * (2 * E + mlp + E)
    return pl.pallas_call(
        _mlp_block_kernel,
        out_shape=jax.ShapeDtypeStruct((M, E), jnp.float32),
        grid=grid,
        in_specs=[
            pl.BlockSpec((tm, E), lambda i: (i, 0)),
            pl.BlockSpec((1, E), lambda i: (0, 0)),
            pl.BlockSpec((1, E), lambda i: (0, 0)),
            pl.BlockSpec((mlp, E), lambda i: (0, 0)),
            pl.BlockSpec((1, mlp), lambda i: (0, 0)),
            pl.BlockSpec((E, mlp), lambda i: (0, 0)),
            pl.BlockSpec((1, E), lambda i: (0, 0)),
        ],
        out_specs=pl.BlockSpec((tm, E), lambda i: (i, 0)),
        compiler_params=pltpu.CompilerParams(
            dimension_semantics=("parallel",),
            vmem_limit_bytes=_VMEM_LIMIT_BYTES),
        cost_estimate=pl.CostEstimate(flops=4 * M * mlp * E,
                                      transcendentals=M * mlp,
                                      bytes_accessed=bytes_accessed),
    )(x2d, gamma.reshape(1, E), beta.reshape(1, E),
      w1_bf16, b1.reshape(1, mlp), w2_bf16, b2.reshape(1, E))


def pallas_attention(qkv, num_heads):
    """qkv: (B, S, 3E) PyTorch in_proj output (f32) -> (B, S, E) f32."""
    B, S, E3 = qkv.shape
    E = E3 // 3
    Dh = E // num_heads
    scale = 1.0 / float(Dh) ** 0.5
    flops = 4 * B * num_heads * S * S * Dh
    trans = B * num_heads * S * S
    bytes_accessed = 4 * (B * S * E3 + B * S * E)

    # Smallest head-group size whose lane width is 128-aligned (e.g. pairs of
    # heads for Dh=64).  Gives aligned q/k/v blocks, H/group x less DMA per
    # step and a longer grid for pipelining / megacore sharding.
    hpg = next((g for g in range(1, num_heads + 1)
                if num_heads % g == 0 and (g * Dh) % 128 == 0), None)

    if hpg is not None:
        G = num_heads // hpg
        W = hpg * Dh
        return pl.pallas_call(
            functools.partial(_attention_group_kernel, heads=hpg, scale=scale),
            out_shape=jax.ShapeDtypeStruct((B, S, E), jnp.float32),
            grid=(B, G),
            in_specs=[
                pl.BlockSpec((1, S, W), lambda b, g: (b, 0, g)),
                pl.BlockSpec((1, S, W), lambda b, g, _G=G: (b, 0, _G + g)),
                pl.BlockSpec((1, S, W), lambda b, g, _G=G: (b, 0, 2 * _G + g)),
            ],
            out_specs=pl.BlockSpec((1, S, W), lambda b, g: (b, 0, g)),
            compiler_params=pltpu.CompilerParams(
                dimension_semantics=("parallel", "parallel"),
                vmem_limit_bytes=_VMEM_LIMIT_BYTES),
            cost_estimate=pl.CostEstimate(flops=flops, transcendentals=trans,
                                          bytes_accessed=bytes_accessed),
        )(qkv, qkv, qkv)

    # Fallback for small / unaligned head dims: whole slab per batch element.
    return pl.pallas_call(
        functools.partial(_attention_slab_kernel, num_heads=num_heads,
                          scale=scale),
        out_shape=jax.ShapeDtypeStruct((B, S, E), jnp.float32),
        grid=(B,),
        in_specs=[pl.BlockSpec((1, S, E3), lambda b: (b, 0, 0))],
        out_specs=pl.BlockSpec((1, S, E), lambda b: (b, 0, 0)),
        compiler_params=pltpu.CompilerParams(
            dimension_semantics=("parallel",),
            vmem_limit_bytes=_VMEM_LIMIT_BYTES),
        cost_estimate=pl.CostEstimate(flops=flops, transcendentals=trans,
                                      bytes_accessed=bytes_accessed),
    )(qkv)


# ---------------------------------------------------------------------------
# ViT forward
# ---------------------------------------------------------------------------
def vit_forward(params, x, *, patch_size, num_heads):
    B, C, Himg, Wimg = x.shape
    P = patch_size
    E = params["patch_w"].shape[0]
    gh, gw = Himg // P, Wimg // P
    Np = gh * gw
    S = Np + 1

    def bf16(w):
        return w.astype(jnp.bfloat16)   # MXU operand; biases/LN params stay f32

    # --- PatchEmbeddingsLayer: strided conv == patch extract + matmul ---
    # flatten order (C, ph, pw) matches the Conv2d weight layout (E, C, P, P).
    patches = (x.reshape(B, C, gh, P, gw, P)
                .transpose(0, 2, 4, 1, 3, 5)
                .reshape(B * Np, C * P * P))
    w_patch = bf16(params["patch_w"].reshape(E, C * P * P))
    pe = pallas_linear(patches, w_patch, params["patch_b"]).reshape(B, Np, E)

    # --- EncoderInputEmbeddingsLayer: prepend class token, add pos emb ---
    cls = jnp.broadcast_to(params["class_token"], (B, 1, E))
    seq = jnp.concatenate([cls, pe], axis=1) + params["pos_emb"]   # (B, S, E)
    seq2d = seq.reshape(B * S, E)
    # embedding / attention / mlp dropouts == identity at inference

    for blk in params["blocks"]:
        # ---- MSA block: LN fused into qkv projection; grouped-head attention ----
        qkv = pallas_ln_linear(seq2d, blk["ln1_g"], blk["ln1_b"],
                               bf16(blk["in_proj_w"]), blk["in_proj_b"])
        attn = pallas_attention(qkv.reshape(B, S, 3 * E), num_heads)   # (B,S,E)
        # out projection with residual add fused into the writeback
        seq2d = pallas_linear(attn.reshape(B * S, E),
                              bf16(blk["out_proj_w"]), blk["out_proj_b"],
                              residual=seq2d)

        # ---- MLP block fully fused: LN + fc1 + GELU + fc2 + residual ----
        seq2d = pallas_mlp_block(seq2d, blk["ln2_g"], blk["ln2_b"],
                                 bf16(blk["fc1_w"]), blk["fc1_b"],
                                 bf16(blk["fc2_w"]), blk["fc2_b"])

    # --- Classifier head on the class token (LN fused into the final linear) ---
    cls_tok = seq2d.reshape(B, S, E)[:, 0]                             # (B, E)
    logits = pallas_ln_linear(cls_tok, params["head_ln_g"], params["head_ln_b"],
                              bf16(params["head_w"]), params["head_b"])
    return logits


# ---------------------------------------------------------------------------
# Deterministic parameter init (shapes per the PyTorch module __init__)
# ---------------------------------------------------------------------------
def init_params(key, *, in_channels, patch_size, embed_dim, img_resolution,
                num_classes, num_encoders, num_heads, mlp_dim):
    keys = iter(jax.random.split(key, 64))

    def nrm(shape, scale=0.02):
        return (scale * jax.random.normal(next(keys), shape)).astype(jnp.float32)

    Np = (img_resolution // patch_size) ** 2
    E = embed_dim
    params = dict(
        patch_w=nrm((E, in_channels, patch_size, patch_size)),
        patch_b=jnp.zeros((E,), jnp.float32),
        class_token=jax.random.normal(next(keys), (1, 1, E), dtype=jnp.float32),
        pos_emb=jax.random.normal(next(keys), (1, Np + 1, E), dtype=jnp.float32),
        head_ln_g=jnp.ones((E,), jnp.float32),
        head_ln_b=jnp.zeros((E,), jnp.float32),
        head_w=nrm((num_classes, E)),
        head_b=jnp.zeros((num_classes,), jnp.float32),
        blocks=[],
    )
    for _ in range(num_encoders):
        params["blocks"].append(dict(
            ln1_g=jnp.ones((E,), jnp.float32), ln1_b=jnp.zeros((E,), jnp.float32),
            in_proj_w=nrm((3 * E, E)), in_proj_b=jnp.zeros((3 * E,), jnp.float32),
            out_proj_w=nrm((E, E)), out_proj_b=jnp.zeros((E,), jnp.float32),
            ln2_g=jnp.ones((E,), jnp.float32), ln2_b=jnp.zeros((E,), jnp.float32),
            fc1_w=nrm((mlp_dim, E)), fc1_b=jnp.zeros((mlp_dim,), jnp.float32),
            fc2_w=nrm((E, mlp_dim)), fc2_b=jnp.zeros((E,), jnp.float32),
        ))
    return params


if __name__ == "__main__":
    # Small ViT config consistent with the module: img=16, patch=4 -> 16 patches, S=17.
    B, C, IMG, P = 2, 4, 16, 4
    E, HEADS, MLP, NCLS, NENC = 32, 4, 64, 10, 2

    key = jax.random.PRNGKey(0)
    params = init_params(
        key, in_channels=C, patch_size=P, embed_dim=E, img_resolution=IMG,
        num_classes=NCLS, num_encoders=NENC, num_heads=HEADS, mlp_dim=MLP)

    x = jax.random.normal(jax.random.fold_in(key, 123), (B, C, IMG, IMG),
                          dtype=jnp.float32)

    fwd = jax.jit(functools.partial(vit_forward, patch_size=P, num_heads=HEADS))
    logits = fwd(params, x)
    logits = jax.block_until_ready(logits)
    assert logits.shape == (B, NCLS), logits.shape
    assert bool(jnp.all(jnp.isfinite(logits)))
    print("KERNEL_OK")
</pallas_src>

<mosaic_0001>
module attributes {stable_mosaic.version = 11 : i64} {
  func.func @_linear_kernel(%arg0: i32, %arg1: i32, %arg2: i32, %arg3: memref<32x64xf32, #tpu.memory_space<vmem>>, %arg4: memref<32x64xbf16, #tpu.memory_space<vmem>>, %arg5: memref<1x32xf32, #tpu.memory_space<vmem>>, %arg6: memref<32x32xf32, #tpu.memory_space<vmem>>, %arg7: memref<32x32xf32, #tpu.memory_space<vmem>>) attributes {dimension_semantics = [#tpu.dimension_semantics<parallel>, #tpu.dimension_semantics<parallel>, #tpu.dimension_semantics<arbitrary>], iteration_bounds = array<i64: 1, 1, 1>, scalar_prefetch = 0 : i64, scratch_operands = 1 : i64, tpu.core_type = #tpu.core_type<tc>, window_params = [{transform_indices = @transform_0, window_bounds = array<i64: 32, 64>}, {transform_indices = @transform_1, window_bounds = array<i64: 32, 64>}, {transform_indices = @transform_2, window_bounds = array<i64: 1, 32>}, {transform_indices = @transform_3, window_bounds = array<i64: 32, 32>}]} {
    %c0_i32 = arith.constant 0 : i32
    %0 = arith.cmpi eq, %arg2, %c0_i32 : i32
    %1 = arith.extui %0 : i1 to i32
    %c0_i32_0 = arith.constant 0 : i32
    %2 = arith.cmpi ne, %1, %c0_i32_0 : i32
    scf.if %2 {
      %cst_10 = arith.constant 0.000000e+00 : f32
      %13 = vector.broadcast %cst_10 : f32 to vector<32x32xf32>
      %c0_11 = arith.constant 0 : index
      %c0_12 = arith.constant 0 : index
      %14 = vector.load %arg7[%c0_11, %c0_12] : memref<32x32xf32, #tpu.memory_space<vmem>>, vector<32x32xf32>
      tpu.vector_store %arg7[%c0_11, %c0_12], %13 {strides = array<i32>} : memref<32x32xf32, #tpu.memory_space<vmem>>, vector<32x32xf32>,
    } else {
    }
    %c0 = arith.constant 0 : index
    %c0_1 = arith.constant 0 : index
    %3 = vector.load %arg7[%c0, %c0_1] : memref<32x32xf32, #tpu.memory_space<vmem>>, vector<32x32xf32>
    %c0_2 = arith.constant 0 : index
    %c0_3 = arith.constant 0 : index
    %4 = vector.load %arg3[%c0_2, %c0_3] : memref<32x64xf32, #tpu.memory_space<vmem>>, vector<32x64xf32>
    %5 = arith.truncf %4 : vector<32x64xf32> to vector<32x64xbf16>
    %c0_4 = arith.constant 0 : index
    %c0_5 = arith.constant 0 : index
    %6 = vector.load %arg4[%c0_4, %c0_5] : memref<32x64xbf16, #tpu.memory_space<vmem>>, vector<32x64xbf16>
    %cst = arith.constant dense<0.000000e+00> : vector<32x32xf32>
    %7 = tpu.matmul %5, %6, %cst {dimension_numbers = #tpu.dot_dimension_numbers<[1], [1], [0], [0], [0, 0, 1, 0], [], []>} : vector<32x64xbf16>, vector<32x64xbf16>, vector<32x32xf32> -> vector<32x32xf32>
    %8 = arith.addf %3, %7 : vector<32x32xf32>
    %c0_6 = arith.constant 0 : index
    %c0_7 = arith.constant 0 : index
    %9 = vector.load %arg7[%c0_6, %c0_7] : memref<32x32xf32, #tpu.memory_space<vmem>>, vector<32x32xf32>
    tpu.vector_store %arg7[%c0_6, %c0_7], %8 {strides = array<i32>} : memref<32x32xf32, #tpu.memory_space<vmem>>, vector<32x32xf32>,
    %c0_i32_8 = arith.constant 0 : i32
    %10 = arith.cmpi eq, %arg2, %c0_i32_8 : i32
    %11 = arith.extui %10 : i1 to i32
    %c0_i32_9 = arith.constant 0 : i32
    %12 = arith.cmpi ne, %11, %c0_i32_9 : i32
    scf.if %12 {
      %c0_10 = arith.constant 0 : index
      %c0_11 = arith.constant 0 : index
      %13 = vector.load %arg7[%c0_10, %c0_11] : memref<32x32xf32, #tpu.memory_space<vmem>>, vector<32x32xf32>
      %c0_12 = arith.constant 0 : index
      %c0_13 = arith.constant 0 : index
      %14 = vector.load %arg5[%c0_12, %c0_13] : memref<1x32xf32, #tpu.memory_space<vmem>>, vector<1x32xf32>
      %15 = vector.broadcast %14 : vector<1x32xf32> to vector<32x32xf32>
      %16 = arith.addf %13, %15 : vector<32x32xf32>
      %c0_14 = arith.constant 0 : index
      %c0_15 = arith.constant 0 : index
      %17 = vector.load %arg6[%c0_14, %c0_15] : memref<32x32xf32, #tpu.memory_space<vmem>>, vector<32x32xf32>
      tpu.vector_store %arg6[%c0_14, %c0_15], %16 {strides = array<i32>} : memref<32x32xf32, #tpu.memory_space<vmem>>, vector<32x32xf32>,
    } else {
    }
    return
  }
  func.func @transform_0(%arg0: i32, %arg1: i32, %arg2: i32) -> (i32, i32) {
    %c0_i32 = arith.constant 0 : i32
    return %arg0, %arg2 : i32, i32
  }
  func.func @transform_1(%arg0: i32, %arg1: i32, %arg2: i32) -> (i32, i32) {
    %c0_i32 = arith.constant 0 : i32
    return %arg1, %arg2 : i32, i32
  }
  func.func @transform_2(%arg0: i32, %arg1: i32, %arg2: i32) -> (i32, i32) {
    %c0_i32 = arith.constant 0 : i32
    %c0_i32_0 = arith.constant 0 : i32
    return %c0_i32, %arg1 : i32, i32
  }
  func.func @transform_3(%arg0: i32, %arg1: i32, %arg2: i32) -> (i32, i32) {
    %c0_i32 = arith.constant 0 : i32
    return %arg0, %arg1 : i32, i32
  }
}

module attributes {stable_mosaic.version = 11 : i64} {
  func.func @_ln_linear_kernel(%arg0: i32, %arg1: memref<34x32xf32, #tpu.memory_space<vmem>>, %arg2: memref<1x32xf32, #tpu.memory_space<vmem>>, %arg3: memref<1x32xf32, #tpu.memory_space<vmem>>, %arg4: memref<96x32xbf16, #tpu.memory_space<vmem>>, %arg5: memref<1x96xf32, #tpu.memory_space<vmem>>, %arg6: memref<34x96xf32, #tpu.memory_space<vmem>>) attributes {dimension_semantics = [#tpu.dimension_semantics<parallel>], iteration_bounds = array<i64: 1>, scalar_prefetch = 0 : i64, scratch_operands = 0 : i64, tpu.core_type = #tpu.core_type<tc>, window_params = [{transform_indices = @transform_0, window_bounds = array<i64: 34, 32>}, {pipeline_mode = #tpu.pipeline_mode<synchronous>, transform_indices = @transform_1, window_bounds = array<i64: 1, 32>}, {pipeline_mode = #tpu.pipeline_mode<synchronous>, transform_indices = @transform_2, window_bounds = array<i64: 1, 32>}, {pipeline_mode = #tpu.pipeline_mode<synchronous>, transform_indices = @transform_3, window_bounds = array<i64: 96, 32>}, {pipeline_mode = #tpu.pipeline_mode<synchronous>, transform_indices = @transform_4, window_bounds = array<i64: 1, 96>}, {transform_indices = @transform_5, window_bounds = array<i64: 34, 96>}]} {
    %c0 = arith.constant 0 : index
    %c0_0 = arith.constant 0 : index
    %0 = vector.load %arg1[%c0, %c0_0] : memref<34x32xf32, #tpu.memory_space<vmem>>, vector<34x32xf32>
    %c0_1 = arith.constant 0 : index
    %c0_2 = arith.constant 0 : index
    %1 = vector.load %arg2[%c0_1, %c0_2] : memref<1x32xf32, #tpu.memory_space<vmem>>, vector<1x32xf32>
    %c0_3 = arith.constant 0 : index
    %c0_4 = arith.constant 0 : index
    %2 = vector.load %arg3[%c0_3, %c0_4] : memref<1x32xf32, #tpu.memory_space<vmem>>, vector<1x32xf32>
    %cst = arith.constant dense<0.000000e+00> : vector<34xf32>
    %3 = vector.multi_reduction <add>, %0, %cst [1] : vector<34x32xf32> to vector<34xf32>
    %4 = vector.shape_cast %3 : vector<34xf32> to vector<34x1xf32>
    %cst_5 = arith.constant 3.200000e+01 : f32
    %5 = vector.broadcast %cst_5 : f32 to vector<34x1xf32>
    %6 = arith.divf %4, %5 : vector<34x1xf32>
    %7 = vector.broadcast %6 : vector<34x1xf32> to vector<34x32xf32>
    %8 = arith.subf %0, %7 : vector<34x32xf32>
    %9 = arith.mulf %8, %8 : vector<34x32xf32>
    %cst_6 = arith.constant dense<0.000000e+00> : vector<34xf32>
    %10 = vector.multi_reduction <add>, %9, %cst_6 [1] : vector<34x32xf32> to vector<34xf32>
    %11 = vector.shape_cast %10 : vector<34xf32> to vector<34x1xf32>
    %cst_7 = arith.constant 3.200000e+01 : f32
    %12 = vector.broadcast %cst_7 : f32 to vector<34x1xf32>
    %13 = arith.divf %11, %12 : vector<34x1xf32>
    %14 = vector.broadcast %6 : vector<34x1xf32> to vector<34x32xf32>
    %15 = arith.subf %0, %14 : vector<34x32xf32>
    %cst_8 = arith.constant 9.99999974E-6 : f32
    %16 = vector.broadcast %cst_8 : f32 to vector<34x1xf32>
    %17 = arith.addf %13, %16 : vector<34x1xf32>
    %18 = math.rsqrt %17 : vector<34x1xf32>
    %19 = vector.broadcast %18 : vector<34x1xf32> to vector<34x32xf32>
    %20 = arith.mulf %15, %19 : vector<34x32xf32>
    %21 = vector.broadcast %1 : vector<1x32xf32> to vector<34x32xf32>
    %22 = arith.mulf %20, %21 : vector<34x32xf32>
    %23 = vector.broadcast %2 : vector<1x32xf32> to vector<34x32xf32>
    %24 = arith.addf %22, %23 : vector<34x32xf32>
    %25 = arith.truncf %24 : vector<34x32xf32> to vector<34x32xbf16>
    %c0_9 = arith.constant 0 : index
    %c0_10 = arith.constant 0 : index
    %26 = vector.load %arg4[%c0_9, %c0_10] : memref<96x32xbf16, #tpu.memory_space<vmem>>, vector<96x32xbf16>
    %cst_11 = arith.constant dense<0.000000e+00> : vector<34x96xf32>
    %27 = tpu.matmul %25, %26, %cst_11 {dimension_numbers = #tpu.dot_dimension_numbers<[1], [1], [0], [0], [0, 0, 1, 0], [], []>} : vector<34x32xbf16>, vector<96x32xbf16>, vector<34x96xf32> -> vector<34x96xf32>
    %c0_12 = arith.constant 0 : index
    %c0_13 = arith.constant 0 : index
    %28 = vector.load %arg5[%c0_12, %c0_13] : memref<1x96xf32, #tpu.memory_space<vmem>>, vector<1x96xf32>
    %29 = vector.broadcast %28 : vector<1x96xf32> to vector<34x96xf32>
    %30 = arith.addf %27, %29 : vector<34x96xf32>
    %c0_14 = arith.constant 0 : index
    %c0_15 = arith.constant 0 : index
    %31 = vector.load %arg6[%c0_14, %c0_15] : memref<34x96xf32, #tpu.memory_space<vmem>>, vector<34x96xf32>
    tpu.vector_store %arg6[%c0_14, %c0_15], %30 {strides = array<i32>} : memref<34x96xf32, #tpu.memory_space<vmem>>, vector<34x96xf32>,
    return
  }
  func.func @transform_0(%arg0: i32) -> (i32, i32) {
    %c0_i32 = arith.constant 0 : i32
    %c0_i32_0 = arith.constant 0 : i32
    return %arg0, %c0_i32 : i32, i32
  }
  func.func @transform_1(%arg0: i32) -> (i32, i32) {
    %c0_i32 = arith.constant 0 : i32
    %c0_i32_0 = arith.constant 0 : i32
    %c0_i32_1 = arith.constant 0 : i32
    return %c0_i32, %c0_i32_0 : i32, i32
  }
  func.func @transform_2(%arg0: i32) -> (i32, i32) {
    %c0_i32 = arith.constant 0 : i32
    %c0_i32_0 = arith.constant 0 : i32
    %c0_i32_1 = arith.constant 0 : i32
    return %c0_i32, %c0_i32_0 : i32, i32
  }
  func.func @transform_3(%arg0: i32) -> (i32, i32) {
    %c0_i32 = arith.constant 0 : i32
    %c0_i32_0 = arith.constant 0 : i32
    %c0_i32_1 = arith.constant 0 : i32
    return %c0_i32, %c0_i32_0 : i32, i32
  }
  func.func @transform_4(%arg0: i32) -> (i32, i32) {
    %c0_i32 = arith.constant 0 : i32
    %c0_i32_0 = arith.constant 0 : i32
    %c0_i32_1 = arith.constant 0 : i32
    return %c0_i32, %c0_i32_0 : i32, i32
  }
  func.func @transform_5(%arg0: i32) -> (i32, i32) {
    %c0_i32 = arith.constant 0 : i32
    %c0_i32_0 = arith.constant 0 : i32
    return %arg0, %c0_i32 : i32, i32
  }
}

module attributes {stable_mosaic.version = 11 : i64} {
  func.func @_attention_slab_kernel(%arg0: i32, %arg1: memref<1x17x96xf32, #tpu.memory_space<vmem>>, %arg2: memref<1x17x32xf32, #tpu.memory_space<vmem>>) attributes {dimension_semantics = [#tpu.dimension_semantics<parallel>], iteration_bounds = array<i64: 2>, scalar_prefetch = 0 : i64, scratch_operands = 0 : i64, tpu.core_type = #tpu.core_type<tc>, window_params = [{transform_indices = @transform_0, window_bounds = array<i64: 1, 17, 96>}, {transform_indices = @transform_1, window_bounds = array<i64: 1, 17, 32>}]} {
    %c0 = arith.constant 0 : index
    %c0_0 = arith.constant 0 : index
    %c0_1 = arith.constant 0 : index
    %0 = vector.load %arg1[%c0, %c0_0, %c0_1] : memref<1x17x96xf32, #tpu.memory_space<vmem>>, vector<1x17x96xf32>
    %1 = vector.shape_cast %0 : vector<1x17x96xf32> to vector<17x96xf32>
    %2 = vector.extract_strided_slice %1 {offsets = [0, 0], sizes = [17, 32], strides = [1, 1]} : vector<17x96xf32> to vector<17x32xf32>
    %3 = vector.extract_strided_slice %1 {offsets = [0, 32], sizes = [17, 32], strides = [1, 1]} : vector<17x96xf32> to vector<17x32xf32>
    %4 = vector.extract_strided_slice %1 {offsets = [0, 64], sizes = [17, 32], strides = [1, 1]} : vector<17x96xf32> to vector<17x32xf32>
    %5 = vector.extract_strided_slice %2 {offsets = [0, 0], sizes = [17, 8], strides = [1, 1]} : vector<17x32xf32> to vector<17x8xf32>
    %cst = arith.constant 0.353553385 : f32
    %6 = vector.broadcast %cst : f32 to vector<17x8xf32>
    %7 = arith.mulf %5, %6 : vector<17x8xf32>
    %8 = arith.truncf %7 : vector<17x8xf32> to vector<17x8xbf16>
    %9 = vector.extract_strided_slice %3 {offsets = [0, 0], sizes = [17, 8], strides = [1, 1]} : vector<17x32xf32> to vector<17x8xf32>
    %10 = arith.truncf %9 : vector<17x8xf32> to vector<17x8xbf16>
    %11 = vector.extract_strided_slice %4 {offsets = [0, 0], sizes = [17, 8], strides = [1, 1]} : vector<17x32xf32> to vector<17x8xf32>
    %12 = arith.truncf %11 : vector<17x8xf32> to vector<17x8xbf16>
    %cst_2 = arith.constant dense<0.000000e+00> : vector<17x17xf32>
    %13 = tpu.matmul %8, %10, %cst_2 {dimension_numbers = #tpu.dot_dimension_numbers<[1], [1], [0], [0], [0, 0, 1, 0], [], []>} : vector<17x8xbf16>, vector<17x8xbf16>, vector<17x17xf32> -> vector<17x17xf32>
    %cst_3 = arith.constant dense<0xFF800000> : vector<17xf32>
    %14 = vector.multi_reduction <maximumf>, %13, %cst_3 [1] : vector<17x17xf32> to vector<17xf32>
    %15 = vector.shape_cast %14 : vector<17xf32> to vector<17x1xf32>
    %16 = vector.broadcast %15 : vector<17x1xf32> to vector<17x17xf32>
    %17 = arith.subf %13, %16 : vector<17x17xf32>
    %18 = math.exp %17 : vector<17x17xf32>
    %cst_4 = arith.constant dense<0.000000e+00> : vector<17xf32>
    %19 = vector.multi_reduction <add>, %18, %cst_4 [1] : vector<17x17xf32> to vector<17xf32>
    %20 = vector.shape_cast %19 : vector<17xf32> to vector<17x1xf32>
    %21 = tpu.reciprocal %20 {approx = true} : vector<17x1xf32> -> vector<17x1xf32>
    %22 = arith.truncf %18 : vector<17x17xf32> to vector<17x17xbf16>
    %cst_5 = arith.constant dense<0.000000e+00> : vector<17x8xf32>
    %23 = tpu.matmul %22, %12, %cst_5 {dimension_numbers = #tpu.dot_dimension_numbers<[1], [0], [0], [1], [0, 0, 1, 1], [], []>} : vector<17x17xbf16>, vector<17x8xbf16>, vector<17x8xf32> -> vector<17x8xf32>
    %24 = vector.broadcast %21 : vector<17x1xf32> to vector<17x8xf32>
    %25 = arith.mulf %23, %24 : vector<17x8xf32>
    %c0_6 = arith.constant 0 : index
    %c0_7 = arith.constant 0 : index
    %c0_8 = arith.constant 0 : index
    %26 = vector.load %arg2[%c0_6, %c0_7, %c0_8] : memref<1x17x32xf32, #tpu.memory_space<vmem>>, vector<1x17x8xf32>
    %27 = vector.shape_cast %26 : vector<1x17x8xf32> to vector<17x8xf32>
    %28 = vector.shape_cast %25 : vector<17x8xf32> to vector<1x17x8xf32>
    tpu.vector_store %arg2[%c0_6, %c0_7, %c0_8], %28 {strides = array<i32>} : memref<1x17x32xf32, #tpu.memory_space<vmem>>, vector<1x17x8xf32>,
    %29 = vector.extract_strided_slice %2 {offsets = [0, 8], sizes = [17, 8], strides = [1, 1]} : vector<17x32xf32> to vector<17x8xf32>
    %cst_9 = arith.constant 0.353553385 : f32
    %30 = vector.broadcast %cst_9 : f32 to vector<17x8xf32>
    %31 = arith.mulf %29, %30 : vector<17x8xf32>
    %32 = arith.truncf %31 : vector<17x8xf32> to vector<17x8xbf16>
    %33 = vector.extract_strided_slice %3 {offsets = [0, 8], sizes = [17, 8], strides = [1, 1]} : vector<17x32xf32> to vector<17x8xf32>
    %34 = arith.truncf %33 : vector<17x8xf32> to vector<17x8xbf16>
    %35 = vector.extract_strided_slice %4 {offsets = [0, 8], sizes = [17, 8], strides = [1, 1]} : vector<17x32xf32> to vector<17x8xf32>
    %36 = arith.truncf %35 : vector<17x8xf32> to vector<17x8xbf16>
    %cst_10 = arith.constant dense<0.000000e+00> : vector<17x17xf32>
    %37 = tpu.matmul %32, %34, %cst_10 {dimension_numbers = #tpu.dot_dimension_numbers<[1], [1], [0], [0], [0, 0, 1, 0], [], []>} : vector<17x8xbf16>, vector<17x8xbf16>, vector<17x17xf32> -> vector<17x17xf32>
    %cst_11 = arith.constant dense<0xFF800000> : vector<17xf32>
    %38 = vector.multi_reduction <maximumf>, %37, %cst_11 [1] : vector<17x17xf32> to vector<17xf32>
    %39 = vector.shape_cast %38 : vector<17xf32> to vector<17x1xf32>
    %40 = vector.broadcast %39 : vector<17x1xf32> to vector<17x17xf32>
    %41 = arith.subf %37, %40 : vector<17x17xf32>
    %42 = math.exp %41 : vector<17x17xf32>
    %cst_12 = arith.constant dense<0.000000e+00> : vector<17xf32>
    %43 = vector.multi_reduction <add>, %42, %cst_12 [1] : vector<17x17xf32> to vector<17xf32>
    %44 = vector.shape_cast %43 : vector<17xf32> to vector<17x1xf32>
    %45 = tpu.reciprocal %44 {approx = true} : vector<17x1xf32> -> vector<17x1xf32>
    %46 = arith.truncf %42 : vector<17x17xf32> to vector<17x17xbf16>
    %cst_13 = arith.constant dense<0.000000e+00> : vector<17x8xf32>
    %47 = tpu.matmul %46, %36, %cst_13 {dimension_numbers = #tpu.dot_dimension_numbers<[1], [0], [0], [1], [0, 0, 1, 1], [], []>} : vector<17x17xbf16>, vector<17x8xbf16>, vector<17x8xf32> -> vector<17x8xf32>
    %48 = vector.broadcast %45 : vector<17x1xf32> to vector<17x8xf32>
    %49 = arith.mulf %47, %48 : vector<17x8xf32>
    %c0_14 = arith.constant 0 : index
    %c0_15 = arith.constant 0 : index
    %c8 = arith.constant 8 : index
    %50 = vector.load %arg2[%c0_14, %c0_15, %c8] : memref<1x17x32xf32, #tpu.memory_space<vmem>>, vector<1x17x8xf32>
    %51 = vector.shape_cast %50 : vector<1x17x8xf32> to vector<17x8xf32>
    %52 = vector.shape_cast %49 : vector<17x8xf32> to vector<1x17x8xf32>
    tpu.vector_store %arg2[%c0_14, %c0_15, %c8], %52 {strides = array<i32>} : memref<1x17x32xf32, #tpu.memory_space<vmem>>, vector<1x17x8xf32>,
    %53 = vector.extract_strided_slice %2 {offsets = [0, 16], sizes = [17, 8], strides = [1, 1]} : vector<17x32xf32> to vector<17x8xf32>
    %cst_16 = arith.constant 0.353553385 : f32
    %54 = vector.broadcast %cst_16 : f32 to vector<17x8xf32>
    %55 = arith.mulf %53, %54 : vector<17x8xf32>
    %56 = arith.truncf %55 : vector<17x8xf32> to vector<17x8xbf16>
    %57 = vector.extract_strided_slice %3 {offsets = [0, 16], sizes = [17, 8], strides = [1, 1]} : vector<17x32xf32> to vector<17x8xf32>
    %58 = arith.truncf %57 : vector<17x8xf32> to vector<17x8xbf16>
    %59 = vector.extract_strided_slice %4 {offsets = [0, 16], sizes = [17, 8], strides = [1, 1]} : vector<17x32xf32> to vector<17x8xf32>
    %60 = arith.truncf %59 : vector<17x8xf32> to vector<17x8xbf16>
    %cst_17 = arith.constant dense<0.000000e+00> : vector<17x17xf32>
    %61 = tpu.matmul %56, %58, %cst_17 {dimension_numbers = #tpu.dot_dimension_numbers<[1], [1], [0], [0], [0, 0, 1, 0], [], []>} : vector<17x8xbf16>, vector<17x8xbf16>, vector<17x17xf32> -> vector<17x17xf32>
    %cst_18 = arith.constant dense<0xFF800000> : vector<17xf32>
    %62 = vector.multi_reduction <maximumf>, %61, %cst_18 [1] : vector<17x17xf32> to vector<17xf32>
    %63 = vector.shape_cast %62 : vector<17xf32> to vector<17x1xf32>
    %64 = vector.broadcast %63 : vector<17x1xf32> to vector<17x17xf32>
    %65 = arith.subf %61, %64 : vector<17x17xf32>
    %66 = math.exp %65 : vector<17x17xf32>
    %cst_19 = arith.constant dense<0.000000e+00> : vector<17xf32>
    %67 = vector.multi_reduction <add>, %66, %cst_19 [1] : vector<17x17xf32> to vector<17xf32>
    %68 = vector.shape_cast %67 : vector<17xf32> to vector<17x1xf32>
    %69 = tpu.reciprocal %68 {approx = true} : vector<17x1xf32> -> vector<17x1xf32>
    %70 = arith.truncf %66 : vector<17x17xf32> to vector<17x17xbf16>
    %cst_20 = arith.constant dense<0.000000e+00> : vector<17x8xf32>
    %71 = tpu.matmul %70, %60, %cst_20 {dimension_numbers = #tpu.dot_dimension_numbers<[1], [0], [0], [1], [0, 0, 1, 1], [], []>} : vector<17x17xbf16>, vector<17x8xbf16>, vector<17x8xf32> -> vector<17x8xf32>
    %72 = vector.broadcast %69 : vector<17x1xf32> to vector<17x8xf32>
    %73 = arith.mulf %71, %72 : vector<17x8xf32>
    %c0_21 = arith.constant 0 : index
    %c0_22 = arith.constant 0 : index
    %c16 = arith.constant 16 : index
    %74 = vector.load %arg2[%c0_21, %c0_22, %c16] : memref<1x17x32xf32, #tpu.memory_space<vmem>>, vector<1x17x8xf32>
    %75 = vector.shape_cast %74 : vector<1x17x8xf32> to vector<17x8xf32>
    %76 = vector.shape_cast %73 : vector<17x8xf32> to vector<1x17x8xf32>
    tpu.vector_store %arg2[%c0_21, %c0_22, %c16], %76 {strides = array<i32>} : memref<1x17x32xf32, #tpu.memory_space<vmem>>, vector<1x17x8xf32>,
    %77 = vector.extract_strided_slice %2 {offsets = [0, 24], sizes = [17, 8], strides = [1, 1]} : vector<17x32xf32> to vector<17x8xf32>
    %cst_23 = arith.constant 0.353553385 : f32
    %78 = vector.broadcast %cst_23 : f32 to vector<17x8xf32>
    %79 = arith.mulf %77, %78 : vector<17x8xf32>
    %80 = arith.truncf %79 : vector<17x8xf32> to vector<17x8xbf16>
    %81 = vector.extract_strided_slice %3 {offsets = [0, 24], sizes = [17, 8], strides = [1, 1]} : vector<17x32xf32> to vector<17x8xf32>
    %82 = arith.truncf %81 : vector<17x8xf32> to vector<17x8xbf16>
    %83 = vector.extract_strided_slice %4 {offsets = [0, 24], sizes = [17, 8], strides = [1, 1]} : vector<17x32xf32> to vector<17x8xf32>
    %84 = arith.truncf %83 : vector<17x8xf32> to vector<17x8xbf16>
    %cst_24 = arith.constant dense<0.000000e+00> : vector<17x17xf32>
    %85 = tpu.matmul %80, %82, %cst_24 {dimension_numbers = #tpu.dot_dimension_numbers<[1], [1], [0], [0], [0, 0, 1, 0], [], []>} : vector<17x8xbf16>, vector<17x8xbf16>, vector<17x17xf32> -> vector<17x17xf32>
    %cst_25 = arith.constant dense<0xFF800000> : vector<17xf32>
    %86 = vector.multi_reduction <maximumf>, %85, %cst_25 [1] : vector<17x17xf32> to vector<17xf32>
    %87 = vector.shape_cast %86 : vector<17xf32> to vector<17x1xf32>
    %88 = vector.broadcast %87 : vector<17x1xf32> to vector<17x17xf32>
    %89 = arith.subf %85, %88 : vector<17x17xf32>
    %90 = math.exp %89 : vector<17x17xf32>
    %cst_26 = arith.constant dense<0.000000e+00> : vector<17xf32>
    %91 = vector.multi_reduction <add>, %90, %cst_26 [1] : vector<17x17xf32> to vector<17xf32>
    %92 = vector.shape_cast %91 : vector<17xf32> to vector<17x1xf32>
    %93 = tpu.reciprocal %92 {approx = true} : vector<17x1xf32> -> vector<17x1xf32>
    %94 = arith.truncf %90 : vector<17x17xf32> to vector<17x17xbf16>
    %cst_27 = arith.constant dense<0.000000e+00> : vector<17x8xf32>
    %95 = tpu.matmul %94, %84, %cst_27 {dimension_numbers = #tpu.dot_dimension_numbers<[1], [0], [0], [1], [0, 0, 1, 1], [], []>} : vector<17x17xbf16>, vector<17x8xbf16>, vector<17x8xf32> -> vector<17x8xf32>
    %96 = vector.broadcast %93 : vector<17x1xf32> to vector<17x8xf32>
    %97 = arith.mulf %95, %96 : vector<17x8xf32>
    %c0_28 = arith.constant 0 : index
    %c0_29 = arith.constant 0 : index
    %c24 = arith.constant 24 : index
    %98 = vector.load %arg2[%c0_28, %c0_29, %c24] : memref<1x17x32xf32, #tpu.memory_space<vmem>>, vector<1x17x8xf32>
    %99 = vector.shape_cast %98 : vector<1x17x8xf32> to vector<17x8xf32>
    %100 = vector.shape_cast %97 : vector<17x8xf32> to vector<1x17x8xf32>
    tpu.vector_store %arg2[%c0_28, %c0_29, %c24], %100 {strides = array<i32>} : memref<1x17x32xf32, #tpu.memory_space<vmem>>, vector<1x17x8xf32>,
    return
  }
  func.func @transform_0(%arg0: i32) -> (i32, i32, i32) {
    %c0_i32 = arith.constant 0 : i32
    %c0_i32_0 = arith.constant 0 : i32
    %c0_i32_1 = arith.constant 0 : i32
    return %arg0, %c0_i32, %c0_i32_0 : i32, i32, i32
  }
  func.func @transform_1(%arg0: i32) -> (i32, i32, i32) {
    %c0_i32 = arith.constant 0 : i32
    %c0_i32_0 = arith.constant 0 : i32
    %c0_i32_1 = arith.constant 0 : i32
    return %arg0, %c0_i32, %c0_i32_0 : i32, i32, i32
  }
}

module attributes {stable_mosaic.version = 11 : i64} {
  func.func @_linear_kernel(%arg0: i32, %arg1: i32, %arg2: i32, %arg3: memref<34x32xf32, #tpu.memory_space<vmem>>, %arg4: memref<32x32xbf16, #tpu.memory_space<vmem>>, %arg5: memref<1x32xf32, #tpu.memory_space<vmem>>, %arg6: memref<34x32xf32, #tpu.memory_space<vmem>>, %arg7: memref<34x32xf32, #tpu.memory_space<vmem>>, %arg8: memref<34x32xf32, #tpu.memory_space<vmem>>) attributes {dimension_semantics = [#tpu.dimension_semantics<parallel>, #tpu.dimension_semantics<parallel>, #tpu.dimension_semantics<arbitrary>], iteration_bounds = array<i64: 1, 1, 1>, scalar_prefetch = 0 : i64, scratch_operands = 1 : i64, tpu.core_type = #tpu.core_type<tc>, window_params = [{transform_indices = @transform_0, window_bounds = array<i64: 34, 32>}, {transform_indices = @transform_1, window_bounds = array<i64: 32, 32>}, {transform_indices = @transform_2, window_bounds = array<i64: 1, 32>}, {transform_indices = @transform_3, window_bounds = array<i64: 34, 32>}, {transform_indices = @transform_4, window_bounds = array<i64: 34, 32>}]} {
    %c0_i32 = arith.constant 0 : i32
    %0 = arith.cmpi eq, %arg2, %c0_i32 : i32
    %1 = arith.extui %0 : i1 to i32
    %c0_i32_0 = arith.constant 0 : i32
    %2 = arith.cmpi ne, %1, %c0_i32_0 : i32
    scf.if %2 {
      %cst_10 = arith.constant 0.000000e+00 : f32
      %13 = vector.broadcast %cst_10 : f32 to vector<34x32xf32>
      %c0_11 = arith.constant 0 : index
      %c0_12 = arith.constant 0 : index
      %14 = vector.load %arg8[%c0_11, %c0_12] : memref<34x32xf32, #tpu.memory_space<vmem>>, vector<34x32xf32>
      tpu.vector_store %arg8[%c0_11, %c0_12], %13 {strides = array<i32>} : memref<34x32xf32, #tpu.memory_space<vmem>>, vector<34x32xf32>,
    } else {
    }
    %c0 = arith.constant 0 : index
    %c0_1 = arith.constant 0 : index
    %3 = vector.load %arg8[%c0, %c0_1] : memref<34x32xf32, #tpu.memory_space<vmem>>, vector<34x32xf32>
    %c0_2 = arith.constant 0 : index
    %c0_3 = arith.constant 0 : index
    %4 = vector.load %arg3[%c0_2, %c0_3] : memref<34x32xf32, #tpu.memory_space<vmem>>, vector<34x32xf32>
    %5 = arith.truncf %4 : vector<34x32xf32> to vector<34x32xbf16>
    %c0_4 = arith.constant 0 : index
    %c0_5 = arith.constant 0 : index
    %6 = vector.load %arg4[%c0_4, %c0_5] : memref<32x32xbf16, #tpu.memory_space<vmem>>, vector<32x32xbf16>
    %cst = arith.constant dense<0.000000e+00> : vector<34x32xf32>
    %7 = tpu.matmul %5, %6, %cst {dimension_numbers = #tpu.dot_dimension_numbers<[1], [1], [0], [0], [0, 0, 1, 0], [], []>} : vector<34x32xbf16>, vector<32x32xbf16>, vector<34x32xf32> -> vector<34x32xf32>
    %8 = arith.addf %3, %7 : vector<34x32xf32>
    %c0_6 = arith.constant 0 : index
    %c0_7 = arith.constant 0 : index
    %9 = vector.load %arg8[%c0_6, %c0_7] : memref<34x32xf32, #tpu.memory_space<vmem>>, vector<34x32xf32>
    tpu.vector_store %arg8[%c0_6, %c0_7], %8 {strides = array<i32>} : memref<34x32xf32, #tpu.memory_space<vmem>>, vector<34x32xf32>,
    %c0_i32_8 = arith.constant 0 : i32
    %10 = arith.cmpi eq, %arg2, %c0_i32_8 : i32
    %11 = arith.extui %10 : i1 to i32
    %c0_i32_9 = arith.constant 0 : i32
    %12 = arith.cmpi ne, %11, %c0_i32_9 : i32
    scf.if %12 {
      %c0_10 = arith.constant 0 : index
      %c0_11 = arith.constant 0 : index
      %13 = vector.load %arg8[%c0_10, %c0_11] : memref<34x32xf32, #tpu.memory_space<vmem>>, vector<34x32xf32>
      %c0_12 = arith.constant 0 : index
      %c0_13 = arith.constant 0 : index
      %14 = vector.load %arg5[%c0_12, %c0_13] : memref<1x32xf32, #tpu.memory_space<vmem>>, vector<1x32xf32>
      %15 = vector.broadcast %14 : vector<1x32xf32> to vector<34x32xf32>
      %16 = arith.addf %13, %15 : vector<34x32xf32>
      %c0_14 = arith.constant 0 : index
      %c0_15 = arith.constant 0 : index
      %17 = vector.load %arg6[%c0_14, %c0_15] : memref<34x32xf32, #tpu.memory_space<vmem>>, vector<34x32xf32>
      %18 = arith.addf %16, %17 : vector<34x32xf32>
      %c0_16 = arith.constant 0 : index
      %c0_17 = arith.constant 0 : index
      %19 = vector.load %arg7[%c0_16, %c0_17] : memref<34x32xf32, #tpu.memory_space<vmem>>, vector<34x32xf32>
      tpu.vector_store %arg7[%c0_16, %c0_17], %18 {strides = array<i32>} : memref<34x32xf32, #tpu.memory_space<vmem>>, vector<34x32xf32>,
    } else {
    }
    return
  }
  func.func @transform_0(%arg0: i32, %arg1: i32, %arg2: i32) -> (i32, i32) {
    %c0_i32 = arith.constant 0 : i32
    return %arg0, %arg2 : i32, i32
  }
  func.func @transform_1(%arg0: i32, %arg1: i32, %arg2: i32) -> (i32, i32) {
    %c0_i32 = arith.constant 0 : i32
    return %arg1, %arg2 : i32, i32
  }
  func.func @transform_2(%arg0: i32, %arg1: i32, %arg2: i32) -> (i32, i32) {
    %c0_i32 = arith.constant 0 : i32
    %c0_i32_0 = arith.constant 0 : i32
    return %c0_i32, %arg1 : i32, i32
  }
  func.func @transform_3(%arg0: i32, %arg1: i32, %arg2: i32) -> (i32, i32) {
    %c0_i32 = arith.constant 0 : i32
    return %arg0, %arg1 : i32, i32
  }
  func.func @transform_4(%arg0: i32, %arg1: i32, %arg2: i32) -> (i32, i32) {
    %c0_i32 = arith.constant 0 : i32
    return %arg0, %arg1 : i32, i32
  }
}

module attributes {stable_mosaic.version = 11 : i64} {
  func.func @_mlp_block_kernel(%arg0: i32, %arg1: memref<34x32xf32, #tpu.memory_space<vmem>>, %arg2: memref<1x32xf32, #tpu.memory_space<vmem>>, %arg3: memref<1x32xf32, #tpu.memory_space<vmem>>, %arg4: memref<64x32xbf16, #tpu.memory_space<vmem>>, %arg5: memref<1x64xf32, #tpu.memory_space<vmem>>, %arg6: memref<32x64xbf16, #tpu.memory_space<vmem>>, %arg7: memref<1x32xf32, #tpu.memory_space<vmem>>, %arg8: memref<34x32xf32, #tpu.memory_space<vmem>>) attributes {dimension_semantics = [#tpu.dimension_semantics<parallel>], iteration_bounds = array<i64: 1>, scalar_prefetch = 0 : i64, scratch_operands = 0 : i64, tpu.core_type = #tpu.core_type<tc>, window_params = [{transform_indices = @transform_0, window_bounds = array<i64: 34, 32>}, {pipeline_mode = #tpu.pipeline_mode<synchronous>, transform_indices = @transform_1, window_bounds = array<i64: 1, 32>}, {pipeline_mode = #tpu.pipeline_mode<synchronous>, transform_indices = @transform_2, window_bounds = array<i64: 1, 32>}, {pipeline_mode = #tpu.pipeline_mode<synchronous>, transform_indices = @transform_3, window_bounds = array<i64: 64, 32>}, {pipeline_mode = #tpu.pipeline_mode<synchronous>, transform_indices = @transform_4, window_bounds = array<i64: 1, 64>}, {pipeline_mode = #tpu.pipeline_mode<synchronous>, transform_indices = @transform_5, window_bounds = array<i64: 32, 64>}, {pipeline_mode = #tpu.pipeline_mode<synchronous>, transform_indices = @transform_6, window_bounds = array<i64: 1, 32>}, {transform_indices = @transform_7, window_bounds = array<i64: 34, 32>}]} {
    %c0 = arith.constant 0 : index
    %c0_0 = arith.constant 0 : index
    %0 = vector.load %arg1[%c0, %c0_0] : memref<34x32xf32, #tpu.memory_space<vmem>>, vector<34x32xf32>
    %c0_1 = arith.constant 0 : index
    %c0_2 = arith.constant 0 : index
    %1 = vector.load %arg2[%c0_1, %c0_2] : memref<1x32xf32, #tpu.memory_space<vmem>>, vector<1x32xf32>
    %c0_3 = arith.constant 0 : index
    %c0_4 = arith.constant 0 : index
    %2 = vector.load %arg3[%c0_3, %c0_4] : memref<1x32xf32, #tpu.memory_space<vmem>>, vector<1x32xf32>
    %cst = arith.constant dense<0.000000e+00> : vector<34xf32>
    %3 = vector.multi_reduction <add>, %0, %cst [1] : vector<34x32xf32> to vector<34xf32>
    %4 = vector.shape_cast %3 : vector<34xf32> to vector<34x1xf32>
    %cst_5 = arith.constant 3.200000e+01 : f32
    %5 = vector.broadcast %cst_5 : f32 to vector<34x1xf32>
    %6 = arith.divf %4, %5 : vector<34x1xf32>
    %7 = vector.broadcast %6 : vector<34x1xf32> to vector<34x32xf32>
    %8 = arith.subf %0, %7 : vector<34x32xf32>
    %9 = arith.mulf %8, %8 : vector<34x32xf32>
    %cst_6 = arith.constant dense<0.000000e+00> : vector<34xf32>
    %10 = vector.multi_reduction <add>, %9, %cst_6 [1] : vector<34x32xf32> to vector<34xf32>
    %11 = vector.shape_cast %10 : vector<34xf32> to vector<34x1xf32>
    %cst_7 = arith.constant 3.200000e+01 : f32
    %12 = vector.broadcast %cst_7 : f32 to vector<34x1xf32>
    %13 = arith.divf %11, %12 : vector<34x1xf32>
    %14 = vector.broadcast %6 : vector<34x1xf32> to vector<34x32xf32>
    %15 = arith.subf %0, %14 : vector<34x32xf32>
    %cst_8 = arith.constant 9.99999974E-6 : f32
    %16 = vector.broadcast %cst_8 : f32 to vector<34x1xf32>
    %17 = arith.addf %13, %16 : vector<34x1xf32>
    %18 = math.rsqrt %17 : vector<34x1xf32>
    %19 = vector.broadcast %18 : vector<34x1xf32> to vector<34x32xf32>
    %20 = arith.mulf %15, %19 : vector<34x32xf32>
    %21 = vector.broadcast %1 : vector<1x32xf32> to vector<34x32xf32>
    %22 = arith.mulf %20, %21 : vector<34x32xf32>
    %23 = vector.broadcast %2 : vector<1x32xf32> to vector<34x32xf32>
    %24 = arith.addf %22, %23 : vector<34x32xf32>
    %25 = arith.truncf %24 : vector<34x32xf32> to vector<34x32xbf16>
    %c0_9 = arith.constant 0 : index
    %c0_10 = arith.constant 0 : index
    %26 = vector.load %arg4[%c0_9, %c0_10] : memref<64x32xbf16, #tpu.memory_space<vmem>>, vector<64x32xbf16>
    %cst_11 = arith.constant dense<0.000000e+00> : vector<34x64xf32>
    %27 = tpu.matmul %25, %26, %cst_11 {dimension_numbers = #tpu.dot_dimension_numbers<[1], [1], [0], [0], [0, 0, 1, 0], [], []>} : vector<34x32xbf16>, vector<64x32xbf16>, vector<34x64xf32> -> vector<34x64xf32>
    %c0_12 = arith.constant 0 : index
    %c0_13 = arith.constant 0 : index
    %28 = vector.load %arg5[%c0_12, %c0_13] : memref<1x64xf32, #tpu.memory_space<vmem>>, vector<1x64xf32>
    %29 = vector.broadcast %28 : vector<1x64xf32> to vector<34x64xf32>
    %30 = arith.addf %27, %29 : vector<34x64xf32>
    %cst_14 = arith.constant 5.000000e-01 : f32
    %31 = vector.broadcast %cst_14 : f32 to vector<34x64xf32>
    %32 = arith.mulf %31, %30 : vector<34x64xf32>
    %cst_15 = arith.constant 0.707106769 : f32
    %33 = vector.broadcast %cst_15 : f32 to vector<34x64xf32>
    %34 = arith.mulf %30, %33 : vector<34x64xf32>
    %cst_16 = arith.constant -4.000000e+00 : f32
    %cst_17 = arith.constant 4.000000e+00 : f32
    %35 = vector.broadcast %cst_16 : f32 to vector<34x64xf32>
    %36 = arith.maximumf %35, %34 : vector<34x64xf32>
    %37 = vector.broadcast %cst_17 : f32 to vector<34x64xf32>
    %38 = arith.minimumf %37, %36 : vector<34x64xf32>
    %39 = arith.mulf %38, %38 : vector<34x64xf32>
    %cst_18 = arith.constant -2.72614237E-10 : f32
    %40 = vector.broadcast %cst_18 : f32 to vector<34x64xf32>
    %41 = arith.mulf %40, %39 : vector<34x64xf32>
    %cst_19 = arith.constant 2.77068146E-8 : f32
    %42 = vector.broadcast %cst_19 : f32 to vector<34x64xf32>
    %43 = arith.addf %41, %42 : vector<34x64xf32>
    %44 = arith.mulf %43, %39 : vector<34x64xf32>
    %cst_20 = arith.constant -2.10102394E-6 : f32
    %45 = vector.broadcast %cst_20 : f32 to vector<34x64xf32>
    %46 = arith.addf %44, %45 : vector<34x64xf32>
    %47 = arith.mulf %46, %39 : vector<34x64xf32>
    %cst_21 = arith.constant -5.69250624E-5 : f32
    %48 = vector.broadcast %cst_21 : f32 to vector<34x64xf32>
    %49 = arith.addf %47, %48 : vector<34x64xf32>
    %50 = arith.mulf %49, %39 : vector<34x64xf32>
    %cst_22 = arith.constant -7.34990637E-4 : f32
    %51 = vector.broadcast %cst_22 : f32 to vector<34x64xf32>
    %52 = arith.addf %50, %51 : vector<34x64xf32>
    %53 = arith.mulf %52, %39 : vector<34x64xf32>
    %cst_23 = arith.constant -2.954600e-03 : f32
    %54 = vector.broadcast %cst_23 : f32 to vector<34x64xf32>
    %55 = arith.addf %53, %54 : vector<34x64xf32>
    %56 = arith.mulf %55, %39 : vector<34x64xf32>
    %cst_24 = arith.constant -0.0160960332 : f32
    %57 = vector.broadcast %cst_24 : f32 to vector<34x64xf32>
    %58 = arith.addf %56, %57 : vector<34x64xf32>
    %cst_25 = arith.constant -1.45660715E-5 : f32
    %59 = vector.broadcast %cst_25 : f32 to vector<34x64xf32>
    %60 = arith.mulf %59, %39 : vector<34x64xf32>
    %cst_26 = arith.constant -2.13374049E-4 : f32
    %61 = vector.broadcast %cst_26 : f32 to vector<34x64xf32>
    %62 = arith.addf %60, %61 : vector<34x64xf32>
    %63 = arith.mulf %62, %39 : vector<34x64xf32>
    %cst_27 = arith.constant -0.00168282702 : f32
    %64 = vector.broadcast %cst_27 : f32 to vector<34x64xf32>
    %65 = arith.addf %63, %64 : vector<34x64xf32>
    %66 = arith.mulf %65, %39 : vector<34x64xf32>
    %cst_28 = arith.constant -0.00737332925 : f32
    %67 = vector.broadcast %cst_28 : f32 to vector<34x64xf32>
    %68 = arith.addf %66, %67 : vector<34x64xf32>
    %69 = arith.mulf %68, %39 : vector<34x64xf32>
    %cst_29 = arith.constant -0.0142647391 : f32
    %70 = vector.broadcast %cst_29 : f32 to vector<34x64xf32>
    %71 = arith.addf %69, %70 : vector<34x64xf32>
    %72 = arith.mulf %38, %58 : vector<34x64xf32>
    %73 = tpu.reciprocal %71 {approx = true} : vector<34x64xf32> -> vector<34x64xf32>
    %74 = arith.mulf %72, %73 : vector<34x64xf32>
    %cst_30 = arith.constant 1.000000e+00 : f32
    %75 = vector.broadcast %cst_30 : f32 to vector<34x64xf32>
    %76 = arith.addf %75, %74 : vector<34x64xf32>
    %77 = arith.mulf %32, %76 : vector<34x64xf32>
    %78 = arith.truncf %77 : vector<34x64xf32> to vector<34x64xbf16>
    %c0_31 = arith.constant 0 : index
    %c0_32 = arith.constant 0 : index
    %79 = vector.load %arg6[%c0_31, %c0_32] : memref<32x64xbf16, #tpu.memory_space<vmem>>, vector<32x64xbf16>
    %cst_33 = arith.constant dense<0.000000e+00> : vector<34x32xf32>
    %80 = tpu.matmul %78, %79, %cst_33 {dimension_numbers = #tpu.dot_dimension_numbers<[1], [1], [0], [0], [0, 0, 1, 0], [], []>} : vector<34x64xbf16>, vector<32x64xbf16>, vector<34x32xf32> -> vector<34x32xf32>
    %c0_34 = arith.constant 0 : index
    %c0_35 = arith.constant 0 : index
    %81 = vector.load %arg7[%c0_34, %c0_35] : memref<1x32xf32, #tpu.memory_space<vmem>>, vector<1x32xf32>
    %82 = vector.broadcast %81 : vector<1x32xf32> to vector<34x32xf32>
    %83 = arith.addf %80, %82 : vector<34x32xf32>
    %84 = arith.addf %83, %0 : vector<34x32xf32>
    %c0_36 = arith.constant 0 : index
    %c0_37 = arith.constant 0 : index
    %85 = vector.load %arg8[%c0_36, %c0_37] : memref<34x32xf32, #tpu.memory_space<vmem>>, vector<34x32xf32>
    tpu.vector_store %arg8[%c0_36, %c0_37], %84 {strides = array<i32>} : memref<34x32xf32, #tpu.memory_space<vmem>>, vector<34x32xf32>,
    return
  }
  func.func @transform_0(%arg0: i32) -> (i32, i32) {
    %c0_i32 = arith.constant 0 : i32
    %c0_i32_0 = arith.constant 0 : i32
    return %arg0, %c0_i32 : i32, i32
  }
  func.func @transform_1(%arg0: i32) -> (i32, i32) {
    %c0_i32 = arith.constant 0 : i32
    %c0_i32_0 = arith.constant 0 : i32
    %c0_i32_1 = arith.constant 0 : i32
    return %c0_i32, %c0_i32_0 : i32, i32
  }
  func.func @transform_2(%arg0: i32) -> (i32, i32) {
    %c0_i32 = arith.constant 0 : i32
    %c0_i32_0 = arith.constant 0 : i32
    %c0_i32_1 = arith.constant 0 : i32
    return %c0_i32, %c0_i32_0 : i32, i32
  }
  func.func @transform_3(%arg0: i32) -> (i32, i32) {
    %c0_i32 = arith.constant 0 : i32
    %c0_i32_0 = arith.constant 0 : i32
    %c0_i32_1 = arith.constant 0 : i32
    return %c0_i32, %c0_i32_0 : i32, i32
  }
  func.func @transform_4(%arg0: i32) -> (i32, i32) {
    %c0_i32 = arith.constant 0 : i32
    %c0_i32_0 = arith.constant 0 : i32
    %c0_i32_1 = arith.constant 0 : i32
    return %c0_i32, %c0_i32_0 : i32, i32
  }
  func.func @transform_5(%arg0: i32) -> (i32, i32) {
    %c0_i32 = arith.constant 0 : i32
    %c0_i32_0 = arith.constant 0 : i32
    %c0_i32_1 = arith.constant 0 : i32
    return %c0_i32, %c0_i32_0 : i32, i32
  }
  func.func @transform_6(%arg0: i32) -> (i32, i32) {
    %c0_i32 = arith.constant 0 : i32
    %c0_i32_0 = arith.constant 0 : i32
    %c0_i32_1 = arith.constant 0 : i32
    return %c0_i32, %c0_i32_0 : i32, i32
  }
  func.func @transform_7(%arg0: i32) -> (i32, i32) {
    %c0_i32 = arith.constant 0 : i32
    %c0_i32_0 = arith.constant 0 : i32
    return %arg0, %c0_i32 : i32, i32
  }
}

module attributes {stable_mosaic.version = 11 : i64} {
  func.func @_ln_linear_kernel(%arg0: i32, %arg1: memref<2x32xf32, #tpu.memory_space<vmem>>, %arg2: memref<1x32xf32, #tpu.memory_space<vmem>>, %arg3: memref<1x32xf32, #tpu.memory_space<vmem>>, %arg4: memref<10x32xbf16, #tpu.memory_space<vmem>>, %arg5: memref<1x10xf32, #tpu.memory_space<vmem>>, %arg6: memref<2x10xf32, #tpu.memory_space<vmem>>) attributes {dimension_semantics = [#tpu.dimension_semantics<parallel>], iteration_bounds = array<i64: 1>, scalar_prefetch = 0 : i64, scratch_operands = 0 : i64, tpu.core_type = #tpu.core_type<tc>, window_params = [{transform_indices = @transform_0, window_bounds = array<i64: 2, 32>}, {pipeline_mode = #tpu.pipeline_mode<synchronous>, transform_indices = @transform_1, window_bounds = array<i64: 1, 32>}, {pipeline_mode = #tpu.pipeline_mode<synchronous>, transform_indices = @transform_2, window_bounds = array<i64: 1, 32>}, {pipeline_mode = #tpu.pipeline_mode<synchronous>, transform_indices = @transform_3, window_bounds = array<i64: 10, 32>}, {pipeline_mode = #tpu.pipeline_mode<synchronous>, transform_indices = @transform_4, window_bounds = array<i64: 1, 10>}, {transform_indices = @transform_5, window_bounds = array<i64: 2, 10>}]} {
    %c0 = arith.constant 0 : index
    %c0_0 = arith.constant 0 : index
    %0 = vector.load %arg1[%c0, %c0_0] : memref<2x32xf32, #tpu.memory_space<vmem>>, vector<2x32xf32>
    %c0_1 = arith.constant 0 : index
    %c0_2 = arith.constant 0 : index
    %1 = vector.load %arg2[%c0_1, %c0_2] : memref<1x32xf32, #tpu.memory_space<vmem>>, vector<1x32xf32>
    %c0_3 = arith.constant 0 : index
    %c0_4 = arith.constant 0 : index
    %2 = vector.load %arg3[%c0_3, %c0_4] : memref<1x32xf32, #tpu.memory_space<vmem>>, vector<1x32xf32>
    %cst = arith.constant dense<0.000000e+00> : vector<2xf32>
    %3 = vector.multi_reduction <add>, %0, %cst [1] : vector<2x32xf32> to vector<2xf32>
    %4 = vector.shape_cast %3 : vector<2xf32> to vector<2x1xf32>
    %cst_5 = arith.constant 3.200000e+01 : f32
    %5 = vector.broadcast %cst_5 : f32 to vector<2x1xf32>
    %6 = arith.divf %4, %5 : vector<2x1xf32>
    %7 = vector.broadcast %6 : vector<2x1xf32> to vector<2x32xf32>
    %8 = arith.subf %0, %7 : vector<2x32xf32>
    %9 = arith.mulf %8, %8 : vector<2x32xf32>
    %cst_6 = arith.constant dense<0.000000e+00> : vector<2xf32>
    %10 = vector.multi_reduction <add>, %9, %cst_6 [1] : vector<2x32xf32> to vector<2xf32>
    %11 = vector.shape_cast %10 : vector<2xf32> to vector<2x1xf32>
    %cst_7 = arith.constant 3.200000e+01 : f32
    %12 = vector.broadcast %cst_7 : f32 to vector<2x1xf32>
    %13 = arith.divf %11, %12 : vector<2x1xf32>
    %14 = vector.broadcast %6 : vector<2x1xf32> to vector<2x32xf32>
    %15 = arith.subf %0, %14 : vector<2x32xf32>
    %cst_8 = arith.constant 9.99999974E-6 : f32
    %16 = vector.broadcast %cst_8 : f32 to vector<2x1xf32>
    %17 = arith.addf %13, %16 : vector<2x1xf32>
    %18 = math.rsqrt %17 : vector<2x1xf32>
    %19 = vector.broadcast %18 : vector<2x1xf32> to vector<2x32xf32>
    %20 = arith.mulf %15, %19 : vector<2x32xf32>
    %21 = vector.broadcast %1 : vector<1x32xf32> to vector<2x32xf32>
    %22 = arith.mulf %20, %21 : vector<2x32xf32>
    %23 = vector.broadcast %2 : vector<1x32xf32> to vector<2x32xf32>
    %24 = arith.addf %22, %23 : vector<2x32xf32>
    %25 = arith.truncf %24 : vector<2x32xf32> to vector<2x32xbf16>
    %c0_9 = arith.constant 0 : index
    %c0_10 = arith.constant 0 : index
    %26 = vector.load %arg4[%c0_9, %c0_10] : memref<10x32xbf16, #tpu.memory_space<vmem>>, vector<10x32xbf16>
    %cst_11 = arith.constant dense<0.000000e+00> : vector<2x10xf32>
    %27 = tpu.matmul %25, %26, %cst_11 {dimension_numbers = #tpu.dot_dimension_numbers<[1], [1], [0], [0], [0, 0, 1, 0], [], []>} : vector<2x32xbf16>, vector<10x32xbf16>, vector<2x10xf32> -> vector<2x10xf32>
    %c0_12 = arith.constant 0 : index
    %c0_13 = arith.constant 0 : index
    %28 = vector.load %arg5[%c0_12, %c0_13] : memref<1x10xf32, #tpu.memory_space<vmem>>, vector<1x10xf32>
    %29 = vector.broadcast %28 : vector<1x10xf32> to vector<2x10xf32>
    %30 = arith.addf %27, %29 : vector<2x10xf32>
    %c0_14 = arith.constant 0 : index
    %c0_15 = arith.constant 0 : index
    %31 = vector.load %arg6[%c0_14, %c0_15] : memref<2x10xf32, #tpu.memory_space<vmem>>, vector<2x10xf32>
    tpu.vector_store %arg6[%c0_14, %c0_15], %30 {strides = array<i32>} : memref<2x10xf32, #tpu.memory_space<vmem>>, vector<2x10xf32>,
    return
  }
  func.func @transform_0(%arg0: i32) -> (i32, i32) {
    %c0_i32 = arith.constant 0 : i32
    %c0_i32_0 = arith.constant 0 : i32
    return %arg0, %c0_i32 : i32, i32
  }
  func.func @transform_1(%arg0: i32) -> (i32, i32) {
    %c0_i32 = arith.constant 0 : i32
    %c0_i32_0 = arith.constant 0 : i32
    %c0_i32_1 = arith.constant 0 : i32
    return %c0_i32, %c0_i32_0 : i32, i32
  }
  func.func @transform_2(%arg0: i32) -> (i32, i32) {
    %c0_i32 = arith.constant 0 : i32
    %c0_i32_0 = arith.constant 0 : i32
    %c0_i32_1 = arith.constant 0 : i32
    return %c0_i32, %c0_i32_0 : i32, i32
  }
  func.func @transform_3(%arg0: i32) -> (i32, i32) {
    %c0_i32 = arith.constant 0 : i32
    %c0_i32_0 = arith.constant 0 : i32
    %c0_i32_1 = arith.constant 0 : i32
    return %c0_i32, %c0_i32_0 : i32, i32
  }
  func.func @transform_4(%arg0: i32) -> (i32, i32) {
    %c0_i32 = arith.constant 0 : i32
    %c0_i32_0 = arith.constant 0 : i32
    %c0_i32_1 = arith.constant 0 : i32
    return %c0_i32, %c0_i32_0 : i32, i32
  }
  func.func @transform_5(%arg0: i32) -> (i32, i32) {
    %c0_i32 = arith.constant 0 : i32
    %c0_i32_0 = arith.constant 0 : i32
    return %arg0, %c0_i32 : i32, i32
  }
}

</mosaic_0001>

<bundles_post_ra>
// kernel: vit_forward.11
= control target key start
LH: loop header
LB: loop body
LE: loop exit
PB: predicated region body
PF: predicated region fallthrough
CT: control target
= control target key end

     0   :  { %vm28_vm0 = vcmask 261120   ;;  %vm41_vm1 = vcmask 254976   ;;  %v339_v10 = vmov 0.0   ;;  %vm340_vm2 = vmmov 0   ;;  %s494_s0 = inlined_call_operand.vmem [shape: f32[34,32], index: 0, kind: input, shape index: {}]   ;;  %s495_s3 = inlined_call_operand.vmem [shape: bf16[96,32], index: 3, kind: input, shape index: {}]   ;;  %s496_s1 = inlined_call_operand.vmem [shape: f32[1,32], index: 1, kind: input, shape index: {}]   ;;  %s497_s2 = inlined_call_operand.vmem [shape: f32[1,32], index: 2, kind: input, shape index: {}]   ;;  %s498_s4 = inlined_call_operand.vmem [shape: f32[1,96], index: 4, kind: input, shape index: {}]   ;;  %s499_s5 = inlined_call_operand.vmem [shape: f32[34,96], index: 5, kind: output, shape index: {}]  }
   0x1   :  { %v23_v0 = vld [vmem:[%s494_s0 + $0x10] sm:$0xff]  ;;  %v24_v1 = vld [vmem:[%s494_s0 + $0x18] sm:$0xff]  ;;  %v21_v2 = vld [vmem:[%s494_s0] sm:$0xff]  ;;  %309 = vmatprep.subr.bf16.mxu1 %v339_v10  ;;  %285 = vmatprep.subr.bf16.mxu0 %v339_v10  ;;  %vm253_vm3 = vcmask 785408   ;;  %vm258_vm4 = vcmask 779264  }
   0x2   :  { %v35_v3 = vsel %vm28_vm0, %v23_v0, 0.0  ;;  %v29_v4 = vsel %vm28_vm0, %v21_v2, 0.0  ;;  %v22_v5 = vld [vmem:[%s494_s0 + $0x8] sm:$0xff]  ;;  %v38_v6 = vsel %vm28_vm0, %v24_v1, 0.0  ;;  %v25_v8 = vld [vmem:[%s494_s0 + $0x20] sm:$0x3]  ;;  %301 = vmatprep.mubr.msk.bf16.mxu1 %vm340_vm2, %v339_v10  ;;  %297 = vmatprep.mubr.msk.bf16.mxu0 %vm340_vm2, %v339_v10 }
   0x3   :  { %36 = vadd.xlane.f32.xlu0 %v35_v3  ;;  %30 = vadd.xlane.f32.xlu1 %v29_v4  ;;  %v32_v7 = vsel %vm28_vm0, %v22_v5, 0.0  ;;  %v42_v9 = vsel %vm41_vm1, %v25_v8, 0.0  ;;  %v323_v11 = vld [vmem:[%s495_s3] sm:$0xff]   ;;  %v324_v13 = vld [vmem:[%s495_s3 + $0x8] sm:$0xff]   ;;  %v325_v15 = vld [vmem:[%s495_s3 + $0x10] sm:$0xff]  }
   0x4   :  { %v180_v12 = vsel %vm28_vm0, %v323_v11, 0  ;;  %v183_v14 = vsel %vm28_vm0, %v324_v13, 0  ;;  %v186_v16 = vsel %vm28_vm0, %v325_v15, 0  ;;  %v326_v42 = vld [vmem:[%s495_s3 + $0x18] sm:$0xff]   ;;  %v327_v44 = vld [vmem:[%s495_s3 + $0x20] sm:$0xff]   ;;  %v328_v46 = vld [vmem:[%s495_s3 + $0x28] sm:$0xff]  }
   0x5   :  { %315 = vmatpush3.bf16.xpose.msra.mxu1 %v180_v12  ;;  %286 = vmatpush3.bf16.xpose.msra.mxu0 %v180_v12  ;;  %v189_v43 = vsel %vm28_vm0, %v326_v42, 0  ;;  %v192_v45 = vsel %vm28_vm0, %v327_v44, 0  ;;  %v195_v47 = vsel %vm28_vm0, %v328_v46, 0 }
   0x6   :  { %310 = vmatprep.subr.bf16.mxu1 %v339_v10  ;;  %287 = vmatprep.subr.bf16.mxu0 %v339_v10 }
   0x7   :  { %39 = vadd.xlane.f32.xlu0 %v38_v6  ;;  %33 = vadd.xlane.f32.xlu1 %v32_v7  ;;  %v265_v7 = vld [vmem:[%s497_s2] ss:$0 sm:$0xff] }
   0xb   :  { %43 = vadd.xlane.f32.xlu0 %v42_v9 }
   0xd   :  { %316 = vmatpush3.bf16.xpose.msra.mxu1 %v183_v14  ;;  %288 = vmatpush3.bf16.xpose.msra.mxu0 %v183_v14 }
   0xe   :  { %311 = vmatprep.subr.bf16.mxu1 %v339_v10  ;;  %289 = vmatprep.subr.bf16.mxu0 %v339_v10 }
  0x15   :  { %317 = vmatpush3.bf16.xpose.msra.mxu1 %v186_v16  ;;  %290 = vmatpush3.bf16.xpose.msra.mxu0 %v186_v16 }
  0x16   :  { %312 = vmatprep.subr.bf16.mxu1 %v339_v10  ;;  %291 = vmatprep.subr.bf16.mxu0 %v339_v10 }
  0x1d   :  { %318 = vmatpush3.bf16.xpose.msra.mxu1 %v189_v43  ;;  %292 = vmatpush3.bf16.xpose.msra.mxu0 %v189_v43 }
  0x1e   :  { %313 = vmatprep.subr.bf16.mxu1 %v339_v10  ;;  %293 = vmatprep.subr.bf16.mxu0 %v339_v10 }
  0x25   :  { %319 = vmatpush3.bf16.xpose.msra.mxu1 %v192_v45  ;;  %294 = vmatpush3.bf16.xpose.msra.mxu0 %v192_v45 }
  0x26   :  { %314 = vmatprep.subr.bf16.mxu1 %v339_v10  ;;  %295 = vmatprep.subr.bf16.mxu0 %v339_v10 }
  0x2d   :  { %320 = vmatpush3.bf16.xpose.msra.mxu1 %v195_v47  ;;  %296 = vmatpush3.bf16.xpose.msra.mxu0 %v195_v47 }
  0x90   :  { %v37_v17 = vpop.xlane.xlu0 %36  ;;  %v31_v18 = vpop.xlane.xlu1 %30 }
  0x91   :  { %v48_v19 = vmul.f32 0.03125, %v37_v17  ;;  %v46_v20 = vmul.f32 0.03125, %v31_v18 }
  0x93   :  { %v411_v21 = vsub.f32 %v23_v0, %v48_v19  ;;  %v413_v22 = vsub.f32 %v21_v2, %v46_v20 }
  0x94   :  { %v40_v23 = vpop.xlane.xlu0 %39  ;;  %v34_v24 = vpop.xlane.xlu1 %33 }
  0x95   :  { %v49_v25 = vmul.f32 0.03125, %v40_v23  ;;  %v58_v26 = vmul.f32 %v411_v21, %v411_v21  ;;  %v47_v27 = vmul.f32 0.03125, %v34_v24  ;;  %v56_v28 = vmul.f32 %v413_v22, %v413_v22 }
  0x97   :  { %v419_v29 = vsub.f32 %v24_v1, %v49_v25  ;;  %v67_v30 = vsel %vm28_vm0, %v58_v26, 0.0  ;;  %v422_v31 = vsub.f32 %v22_v5, %v47_v27  ;;  %v61_v35 = vsel %vm28_vm0, %v56_v28, 0.0  ;;  %v264_v1 = vld [vmem:[%s496_s1] ss:$0 sm:$0xff] }
  0x98   :  { %v44_v32 = vpop.xlane.xlu0 %43  ;;  %68 = vadd.xlane.f32.xlu1 %v67_v30  ;;  %v266_v25 = vld [vmem:[%s498_s4] ss:$0 sm:$0xff] }
  0x99   :  { %v50_v33 = vmul.f32 0.03125, %v44_v32  ;;  %v59_v34 = vmul.f32 %v419_v29, %v419_v29  ;;  %v57_v36 = vmul.f32 %v422_v31, %v422_v31 }
  0x9b   :  { %v429_v37 = vsub.f32 %v25_v8, %v50_v33  ;;  %v70_v38 = vsel %vm28_vm0, %v59_v34, 0.0  ;;  %v64_v40 = vsel %vm28_vm0, %v57_v36, 0.0 }
  0x9c   :  { %71 = vadd.xlane.f32.xlu0 %v70_v38  ;;  %62 = vadd.xlane.f32.xlu1 %v61_v35 }
  0x9d   :  { %v60_v39 = vmul.f32 %v429_v37, %v429_v37 }
  0x9f   :  { %v73_v41 = vsel %vm41_vm1, %v60_v39, 0.0 }
  0xa0   :  { %74 = vadd.xlane.f32.xlu1 %v73_v41  ;;  %65 = vadd.xlane.f32.xlu0 %v64_v40 }
 0x125   :  { %v69_v48 = vpop.xlane.xlu1 %68 }
 0x126   :  { %v78_v49 = vmul.f32 0.03125, %v69_v48 }
 0x128   :  { %v83_v50 = vadd.f32 1e-05, %v78_v49 }
 0x129   :  { %v72_v51 = vpop.xlane.xlu0 %71  ;;  %v63_v52 = vpop.xlane.xlu1 %62 }
 0x12a   :  { %329 = vrsqrt.f32 %v83_v50  ;;  %v79_v53 = vmul.f32 0.03125, %v72_v51  ;;  %v76_v54 = vmul.f32 0.03125, %v63_v52 }
 0x12c   :  { %v84_v55 = vadd.f32 1e-05, %v79_v53  ;;  %v81_v56 = vadd.f32 1e-05, %v76_v54 }
 0x12d   :  { %v66_v57 = vpop.xlane.xlu0 %65  ;;  %v75_v58 = vpop.xlane.xlu1 %74 }
 0x12e   :  { %331 = vrsqrt.f32 %v84_v55  ;;  %v77_v59 = vmul.f32 0.03125, %v66_v57  ;;  %v80_v60 = vmul.f32 0.03125, %v75_v58 }
 0x12f   :  { %333 = vrsqrt.f32 %v81_v56 }
 0x130   :  { %v82_v61 = vadd.f32 1e-05, %v77_v59  ;;  %v85_v62 = vadd.f32 1e-05, %v80_v60 }
 0x132   :  { %335 = vrsqrt.f32 %v82_v61 }
 0x133   :  { %337 = vrsqrt.f32 %v85_v62 }
 0x134   :  { %v330_v63 = vpop.eup %329 }
 0x135   :  { %v93_v0 = vmul.f32 %v330_v63, %v411_v21 }
 0x137   :  { %v104_v5 = vmul.f32 %v264_v1, %v93_v0 }
 0x138   :  { %v332_v2 = vpop.eup %331 }
 0x139   :  { %v334_v3 = vpop.eup %333  ;;  %v94_v4 = vmul.f32 %v332_v2, %v419_v29  ;;  %v115_v13 = vadd.f32 %v265_v7, %v104_v5 }
 0x13a   :  { %v91_v6 = vmul.f32 %v334_v3, %v413_v22 }
 0x13b   :  { %v105_v8 = vmul.f32 %v264_v1, %v94_v4 }
 0x13c   :  { %v336_v9 = vpop.eup %335  ;;  %v102_v15 = vmul.f32 %v264_v1, %v91_v6 }
 0x13d   :  { %v338_v11 = vpop.eup %337  ;;  %v92_v12 = vmul.f32 %v336_v9, %v422_v31  ;;  %v116_v14 = vadd.f32 %v265_v7, %v105_v8 }
 0x13e   :  { %v95_v16 = vmul.f32 %v338_v11, %v429_v37  ;;  %v113_v20 = vadd.f32 %v265_v7, %v102_v15 }
 0x13f   :  { %v119_v17 = vpack.c.bf16 %v116_v14, %v115_v13  ;;  %v103_v18 = vmul.f32 %v264_v1, %v92_v12 }
 0x140   :  { %v106_v19 = vmul.f32 %v264_v1, %v95_v16 }
 0x141   :  { %302 = vmatmul.mubr.msk.bf16.vlgmr.msra.gmra.mrb[0].mxu1 %vm28_vm0, %v119_v17  ;;  %v114_v21 = vadd.f32 %v265_v7, %v103_v18 }
 0x142   :  { %305 = vmatprep.mubr.msk.bf16.mxu1 %vm340_vm2, %v339_v10  ;;  %v117_v23 = vadd.f32 %v265_v7, %v106_v19 }
 0x143   :  { %v118_v22 = vpack.c.bf16 %v114_v21, %v113_v20 }
 0x144   :  { %v120_v24 = vpack.c.bf16 %v117_v23, %v117_v23 }
 0x145   :  { %298 = vmatmul.mubr.msk.bf16.vlgmr.msra.gmra.mrb[0].mxu0 %vm28_vm0, %v118_v22 }
 0x149   :  { %306 = vmatmul.mubr.msk.bf16.gmra.mrb[4].mxu1 %vm28_vm0, %v120_v24 }
 0x214   :  { %v239_v26 = vpop.f32.mrb[0].mxu1 }
 0x215   :  { %v240_v27 = vadd.f32 %v266_v25, %v239_v26  ;;  %v303_v28 = vpop.f32.mrb[1].mxu1 }
 0x216   :  { %v242_v29 = vpop.f32.mrb[2].mxu1 }
 0x217   :  { %256 = vst.msk [vmem:[%s499_s5 + $0x10] sm:$0xff] %vm253_vm3, %v240_v27  ;;  %v243_v10 = vadd.f32 %v266_v25, %v242_v29  ;;  %v304_v30 = vpop.f32.mrb[3].mxu1 }
 0x218   :  { %v231_v31 = vpop.f32.mrb[0].mxu0 }
 0x219   :  { %257 = vst.msk [vmem:[%s499_s5 + $0x18] sm:$0xff] %vm253_vm3, %v243_v10  ;;  %v232_v32 = vadd.f32 %v266_v25, %v231_v31  ;;  %v299_v33 = vpop.f32.mrb[1].mxu0 }
 0x21a   :  { %v234_v34 = vpop.f32.mrb[2].mxu0 }
 0x21b   :  { %254 = vst.msk [vmem:[%s499_s5] sm:$0xff] %vm253_vm3, %v232_v32  ;;  %v235_v35 = vadd.f32 %v266_v25, %v234_v34  ;;  %v300_v36 = vpop.f32.mrb[3].mxu0 }
 0x21c   :  { %v247_v37 = vpop.f32.mrb[4].mxu1 }
 0x21d   :  { %255 = vst.msk [vmem:[%s499_s5 + $0x8] sm:$0xff] %vm253_vm3, %v235_v35  ;;  %v248_v38 = vadd.f32 %v266_v25, %v247_v37  ;;  %v307_v39 = vpop.f32.mrb[5].mxu1 }
 0x21e   :  { %v250_v40 = vpop.f32.mrb[6].mxu1 }
 0x21f   :  { %259 = vst.msk [vmem:[%s499_s5 + $0x20] sm:$0x3] %vm258_vm4, %v248_v38  ;;  %v308_v41 = vpop.f32.mrb[7].mxu1 }

// kernel: vit_forward.10
= control target key start
LH: loop header
LB: loop body
LE: loop exit
PB: predicated region body
PF: predicated region fallthrough
CT: control target
= control target key end

     0   :  { %vm48_vm0 = vcmask 523264   ;;  %vm19_vm1 = vcmask 261120   ;;  %v167_v1 = vmov 0.0   ;;  %s239_s1 = inlined_call_operand.vmem [shape: bf16[32,64], index: 1, kind: input, shape index: {}]   ;;  %s240_s0 = inlined_call_operand.vmem [shape: f32[32,64], index: 0, kind: input, shape index: {}]   ;;  %s241_s2 = inlined_call_operand.vmem [shape: f32[1,32], index: 2, kind: input, shape index: {}]   ;;  %s242_s3 = inlined_call_operand.vmem [shape: f32[32,32], index: 3, kind: output, shape index: {}]  }
   0x1   :  { %v165_v0 = vld [vmem:[%s239_s1] sm:$0xff]   ;;  %22 = vst.msk [vmem:[#allocation2 + $0x10] sm:$0xff] %vm19_vm1, %v167_v1  ;;  %20 = vst.msk [vmem:[#allocation2] sm:$0xff] %vm19_vm1, %v167_v1  ;;  %v166_v2 = vld [vmem:[%s239_s1 + $0x8] sm:$0xff]  }
   0x2   :  { %21 = vst.msk [vmem:[#allocation2 + $0x8] sm:$0xff] %vm19_vm1, %v167_v1  ;;  %23 = vst.msk [vmem:[#allocation2 + $0x18] sm:$0xff] %vm19_vm1, %v167_v1  ;;  %162 = vmatprep.subr.msk.bf16.mxu0 %vm48_vm0, %v165_v0  ;;  %v56_v3 = vsel %vm48_vm0, %v165_v0, 0  ;;  %v28_v4 = vld [vmem:[%s240_s0] sm:$0xff]  ;;  %v29_v5 = vld [vmem:[%s240_s0 + $0x8] sm:$0xff]  ;;  %v59_v7 = vsel %vm48_vm0, %v166_v2, 0 }
   0x3   :  { %155 = vmatpush3.bf16.xpose.msra.mxu0 %v56_v3  ;;  %v32_v6 = vpack.c.bf16 %v29_v5, %v28_v4  ;;  %v30_v8 = vld [vmem:[%s240_s0 + $0x10] sm:$0xff]  ;;  %v31_v9 = vld [vmem:[%s240_s0 + $0x18] sm:$0xff]  ;;  %v149_v23 = vld [vmem:[%s241_s2] ss:$0 sm:$0xff] }
   0x4   :  { %163 = vmatprep.subr.msk.bf16.mxu0 %vm48_vm0, %v166_v2  ;;  %v33_v10 = vpack.c.bf16 %v31_v9, %v30_v8 }
   0x5   :  { %158 = vmatprep.mubr.msk.bf16.mxu0 %vm48_vm0, %v32_v6 }
   0x8   :  { %v26_v11 = vld [vmem:[#allocation2 + $0x10] sm:$0xff]  ;;  %v24_v12 = vld [vmem:[#allocation2] sm:$0xff] }
   0x9   :  { %v27_v14 = vld [vmem:[#allocation2 + $0x18] sm:$0xff]  ;;  %v25_v17 = vld [vmem:[#allocation2 + $0x8] sm:$0xff] }
   0xb   :  { %157 = vmatpush3.bf16.xpose.msra.mxu0 %v59_v7 }
  0x12   :  { %159 = vmatmul.mubr.msk.bf16.vlgmr.msra.gmra.mrb[0].mxu0 %vm48_vm0, %v33_v10 }
  0xe5   :  { %v160_v13 = vpop.f32.mrb[0].mxu0 }
  0xe6   :  { %v112_v15 = vadd.f32 %v160_v13, %v26_v11  ;;  %v95_v16 = vpop.f32.mrb[1].mxu0 }
  0xe7   :  { %v110_v18 = vadd.f32 %v95_v16, %v24_v12  ;;  %v161_v19 = vpop.f32.mrb[2].mxu0 }
  0xe8   :  { %117 = vst.msk [vmem:[#allocation2 + $0x10] sm:$0xff] %vm19_vm1, %v112_v15  ;;  %v113_v20 = vadd.f32 %v161_v19, %v27_v14  ;;  %v98_v21 = vpop.f32.mrb[3].mxu0 }
  0xe9   :  { %115 = vst.msk [vmem:[#allocation2] sm:$0xff] %vm19_vm1, %v110_v18  ;;  %v111_v22 = vadd.f32 %v98_v21, %v25_v17 }
  0xea   :  { %118 = vst.msk [vmem:[#allocation2 + $0x18] sm:$0xff] %vm19_vm1, %v113_v20 }
  0xeb   :  { %116 = vst.msk [vmem:[#allocation2 + $0x8] sm:$0xff] %vm19_vm1, %v111_v22 }
  0xef   :  { %v124_v24 = vld [vmem:[#allocation2 + $0x10] sm:$0xff] }
  0xf0   :  { %v135_v25 = vadd.f32 %v149_v23, %v124_v24  ;;  %v122_v26 = vld [vmem:[#allocation2] sm:$0xff] }
  0xf1   :  { %v133_v27 = vadd.f32 %v149_v23, %v122_v26  ;;  %v125_v28 = vld [vmem:[#allocation2 + $0x18] sm:$0xff] }
  0xf2   :  { %139 = vst.msk [vmem:[%s242_s3 + $0x10] sm:$0xff] %vm19_vm1, %v135_v25  ;;  %v136_v29 = vadd.f32 %v149_v23, %v125_v28  ;;  %v123_v30 = vld [vmem:[#allocation2 + $0x8] sm:$0xff] }
  0xf3   :  { %137 = vst.msk [vmem:[%s242_s3] sm:$0xff] %vm19_vm1, %v133_v27  ;;  %v134_v31 = vadd.f32 %v149_v23, %v123_v30 }
  0xf4   :  { %140 = vst.msk [vmem:[%s242_s3 + $0x18] sm:$0xff] %vm19_vm1, %v136_v29 }
  0xf5   :  { %138 = vst.msk [vmem:[%s242_s3 + $0x8] sm:$0xff] %vm19_vm1, %v134_v31 }

// kernel: vit_forward.12
= control target key start
LH: loop header
LB: loop body
LE: loop exit
PB: predicated region body
PF: predicated region fallthrough
CT: control target
= control target key end

     0   :  { %s1138_s6 = smov 0   ;;  %s1329_s0 = inlined_call_operand.vmem [shape: f32[2,17,96], index: 0, kind: input, shape index: {}]   ;;  %s1330_s1 = inlined_call_operand.vmem [shape: f32[2,17,32], index: 1, kind: output, shape index: {}]  }
   0x1 LB: > { %s904_s7 = sadd.s32 4294967295, %s1111_s6   ;;  %p908_p0 = scmp.ge.s32.totalorder %s1111_s6, 1  ;;  %s1111_s6 = sphi %s1138_s6, %s11_s6  }
   0x2   : > { %p87_p1 = scmp.lt.s32.totalorder %s1111_s6, 3 }
   0x4   : > { %p88_p2 = pnand %p908_p0, %p87_p1 }
   0x5   : > { %p107_p3 = scmp.lt.s32.totalorder (!%p88_p2), %s904_s7, 1  ;;  %s1113_s12 = smov (!%p88_p2), 96   ;;  %vm134_vm0 = vcmask (!%p88_p2), 64512   ;;  %vm240_vm1 = vcmask (!%p88_p2), 1040384   ;;  %v1115_v15 = vmov (!%p88_p2), 0   ;;  %vm202_vm2 = vcmask (!%p88_p2), 131072  }
   0x6   : > { %91 = sbr.rel (%p88_p2) target bundleno = 2043 (0x7fb), region = 24  ;;  %s1114_s13 = smov (!%p88_p2), 64   ;;  %v1174_v16 = vsel (!%p88_p2), %vm240_vm1, 65535, %v1115_v15  ;;  %vm195_vm3 = vcmask (!%p88_p2), 138240   ;;  %vm480_vm4 = vcmask (!%p88_p2), 130112   ;;  %vm299_vm5 = vcmask (!%p88_p2), 57344  }
   0x7   : > { %s1116_s14 = smov (!%p88_p2), 88   ;;  %s1117_s15 = smov (!%p88_p2), 120   ;;  %vm483_vm6 = vcmask (!%p88_p2), 122944   ;;  %vm662_vm7 = vcmask (!%p88_p2), 195712   ;;  %vm665_vm8 = vcmask (!%p88_p2), 188544   ;;  %vm844_vm9 = vcmask (!%p88_p2), 261312  }
   0x8   : > { %s1118_s16 = smov (!%p88_p2), 56   ;;  %s1119_s17 = smov (!%p88_p2), 80   ;;  %vm847_vm10 = vcmask (!%p88_p2), 254144  }
   0x9   : > { %s1120_s18 = smov (!%p88_p2), 112   ;;  %s1121_s19 = smov (!%p88_p2), 48  }
   0xa   : > { %s1122_s20 = smov (!%p88_p2), 72   ;;  %s1123_s21 = smov (!%p88_p2), 104  }
   0xb   : > { %s1124_s22 = smov (!%p88_p2), 40   ;;  %s1125_s23 = smov (!%p88_p2), 8  }
   0xc   : > { %s1126_s24 = smov (!%p88_p2), 16   ;;  %s1127_s28 = smov (!%p88_p2), 24  }
   0xd   : > { %s1332_s7 = smov (!%p107_p3, %s904_s7), 1 }
   0xe   : > { %s1033_s8 = smul.u32 24, %s1332_s7 }
  0x10   : > { %s111_s11 = scalar_lea.vmem %s1329_s0, %s1033_s8  ;;  %s1307_s27 = scalar_lea.vmem %s1330_s1, %s1033_s8 }
  0x11   : > { %v118_v0 = vld [vmem:[%s111_s11] sm:$0xff]  ;;  %v119_v1 = vld [vmem:[%s111_s11 + $0x8] sm:$0xff]  ;;  %v120_v2 = vld [vmem:[%s111_s11 + $0x10] sm:$0x1] }
  0x12   : > { %v1154_v3 = vpack.c.bf16 %v119_v1, %v118_v0  ;;  %v121_v4 = vmul.f32 0.35355338, %v118_v0  ;;  %v122_v5 = vmul.f32 0.35355338, %v119_v1  ;;  %v1157_v6 = vpack.c.bf16 %v120_v2, %v120_v2 }
  0x13   : > { %v123_v12 = vmul.f32 0.35355338, %v120_v2 }
  0x14   : > { %130 = vrot.lane.b32.xlu0 %v1154_v3, %s1113_s12  ;;  %v1159_v7 = vpack.c.bf16 %v122_v5, %v121_v4  ;;  %229 = vrot.lane.b32.xlu1 %v1154_v3, %s1114_s13 }
  0x15   : > { %v1170_v13 = vpack.c.bf16 %v123_v12, %v123_v12 }
  0x16   : > { %965 = vmatprep.mubr.msk.bf16.mxu0 %vm134_vm0, %v1159_v7 }
  0x18   : > { %132 = vrot.lane.b32.xlu0 %v1157_v6, %s1113_s12  ;;  %231 = vrot.lane.b32.xlu1 %v1157_v6, %s1114_s13 }
  0x86   : > { %v131_v8 = vpop.permute.xlu0 %130  ;;  %v230_v14 = vpop.permute.xlu1 %229 }
  0x87   : > { %1025 = vmatprep.subr.msk.bf16.mxu0 %vm134_vm0, %v131_v8  ;;  %v142_v9 = vsel %vm134_vm0, %v131_v8, 0  ;;  %969 = vmatprep.subr.bf16.mxu1 %v230_v14 }
  0x88   : > { %962 = vmatpush3.bf16.xpose.msra.mxu0 %v142_v9  ;;  %970 = vmatpush3.bf16.msra.mxu1 %v230_v14 }
  0x8a   : > { %v133_v10 = vpop.permute.xlu0 %132  ;;  %v232_v17 = vpop.permute.xlu1 %231 }
  0x8b   : > { %1026 = vmatprep.subr.msk.bf16.mxu0 %vm134_vm0, %v133_v10  ;;  %v145_v11 = vsel %vm134_vm0, %v133_v10, 0  ;;  %v244_v18 = vand.u32 %v1174_v16, %v232_v17 }
  0x8d   : > { %971 = vmatprep.subr.bf16.mxu1 %v244_v18 }
  0x8e   : > { %972 = vmatpush3.bf16.msra.mxu1 %v244_v18 }
  0x90   : > { %964 = vmatpush3.bf16.xpose.msra.mxu0 %v145_v11 }
  0x97   : > { %966 = vmatmul.mubr.msk.bf16.vlgmr.msra.gmra.mrb[0].mxu0 %vm134_vm0, %v1170_v13 }
 0x16a   : > { %v967_v19 = vpop.f32.mrb[0].mxu0 }
 0x16b   : > { %v181_v20 = vpop.f32.mrb[1].mxu0  ;;  %v203_v21 = vsel %vm202_vm2, %v967_v19, -inf }
 0x16c   : > { %204 = vmax.xlane.f32.xlu0 %v203_v21  ;;  %v968_v22 = vpop.f32.mrb[2].mxu0  ;;  %v196_v23 = vsel %vm195_vm3, %v181_v20, -inf }
 0x16d   : > { %197 = vmax.xlane.f32.xlu1 %v196_v23  ;;  %v184_v24 = vpop.f32.mrb[3].mxu0 }
 0x16e   : > { %v199_v25 = vsel %vm195_vm3, %v184_v24, -inf }
 0x171   : > { %200 = vmax.xlane.f32.xlu1 %v199_v25 }
 0x182   : > { %307 = vrot.lane.b32.xlu1 %v1154_v3, %s1116_s14  ;;  %305 = vrot.lane.b32.xlu0 %v1170_v13, %s1117_s15 }
 0x186   : > { %309 = vrot.lane.b32.xlu1 %v1157_v6, %s1116_s14 }
 0x18a   : > { %303 = vrot.lane.b32.xlu1 %v1159_v7, %s1117_s15 }
 0x18e   : > { %403 = vrot.lane.b32.xlu1 %v1154_v3, %s1118_s16 }
 0x1f9   : > { %v205_v26 = vpop.xlane.xlu0 %204 }
 0x1fa   : > { %v208_v27 = vsub.f32 %v967_v19, %v205_v26  ;;  %v198_v28 = vpop.xlane.xlu1 %197 }
 0x1fb   : > { %v206_v29 = vsub.f32 %v181_v20, %v198_v28 }
 0x1fc   : > { %v213_v30 = vmul.f32 1.442695, %v208_v27 }
 0x1fd   : > { %v209_v31 = vmul.f32 1.442695, %v206_v29  ;;  %v306_v45 = vpop.permute.xlu0 %305 }
 0x1fe   : > { %v201_v32 = vpop.xlane.xlu1 %200  ;;  %1057 = vpow2.f32 %v213_v30 }
 0x1ff   : > { %v207_v33 = vsub.f32 %v184_v24, %v201_v32  ;;  %1059 = vpow2.f32 %v209_v31 }
 0x201   : > { %v211_v34 = vmul.f32 1.442695, %v207_v33 }
 0x202   : > { %v308_v35 = vpop.permute.xlu1 %307 }
 0x203   : > { %1061 = vpow2.f32 %v211_v34  ;;  %1027 = vmatprep.subr.msk.bf16.mxu1 %vm134_vm0, %v308_v35  ;;  %v318_v41 = vsel %vm134_vm0, %v308_v35, 0 }
 0x206   : > { %v310_v37 = vpop.permute.xlu1 %309 }
 0x207   : > { %v321_v44 = vsel %vm134_vm0, %v310_v37, 0 }
 0x208   : > { %v1187_v36 = vpop.eup %1057 }
 0x209   : > { %v1189_v38 = vpop.eup %1059  ;;  %v228_v42 = vpack.c.bf16 %v1187_v36, %v1187_v36 }
 0x20a   : > { %v304_v43 = vpop.permute.xlu1 %303 }
 0x20d   : > { %v1191_v39 = vpop.eup %1061 }
 0x20e   : > { %v227_v40 = vpack.c.bf16 %v1191_v39, %v1189_v38  ;;  %v404_v46 = vpop.permute.xlu1 %403 }
 0x20f   : > { %985 = vmatprep.subr.bf16.mxu0 %v404_v46 }
 0x210   : > { %973 = vmatprep.mubr.msk.bf16.mxu1 %vm195_vm3, %v227_v40  ;;  %986 = vmatpush3.bf16.msra.mxu0 %v404_v46 }
 0x211   : > { %974 = vmatmul.mubr.msk.bf16.vlgmr.msra.gmra.mrb[0].mxu1 %vm195_vm3, %v228_v42 }
 0x212   : > { %978 = vmatpush3.bf16.xpose.msra.mxu1 %v318_v41  ;;  %981 = vmatprep.mubr.msk.bf16.mxu1 %vm134_vm0, %v304_v43 }
 0x213   : > { %1028 = vmatprep.subr.msk.bf16.mxu1 %vm134_vm0, %v310_v37 }
 0x21a   : > { %980 = vmatpush3.bf16.xpose.msra.mxu1 %v321_v44 }
 0x221   : > { %982 = vmatmul.mubr.msk.bf16.vlgmr.msra.gmra.mrb[4].mxu1 %vm134_vm0, %v306_v45 }
 0x2e4   : > { %v1204_v47 = vpop.f32.mrb[0].mxu1 }
 0x2e5   : > { %v1206_v48 = vpop.f32.mrb[1].mxu1 }
 0x2e6   : > { %v976_v49 = vpop.f32.mrb[2].mxu1 }
 0x2e7   : > { %v1208_v50 = vpop.f32.mrb[3].mxu1 }
 0x2f4   : > { %v983_v51 = vpop.f32.mrb[4].mxu1 }
 0x2f5   : > { %v357_v52 = vpop.f32.mrb[5].mxu1  ;;  %v377_v53 = vsel %vm202_vm2, %v983_v51, -inf }
 0x2f6   : > { %378 = vmax.xlane.f32.xlu1 %v377_v53  ;;  %v984_v54 = vpop.f32.mrb[6].mxu1  ;;  %v371_v57 = vsel %vm195_vm3, %v357_v52, -inf }
 0x2f7   : > { %v360_v55 = vpop.f32.mrb[7].mxu1 }
 0x2f8   : > { %v374_v56 = vsel %vm195_vm3, %v360_v55, -inf }
 0x2f9   : > { %375 = vmax.xlane.f32.xlu0 %v374_v56 }
 0x2fa   : > { %372 = vmax.xlane.f32.xlu1 %v371_v57 }
 0x30b   : > { %489 = vrot.lane.b32.xlu1 %v1154_v3, %s1119_s17 }
 0x30f   : > { %405 = vrot.lane.b32.xlu0 %v1157_v6, %s1118_s16  ;;  %491 = vrot.lane.b32.xlu1 %v1157_v6, %s1119_s17 }
 0x313   : > { %485 = vrot.lane.b32.xlu1 %v1159_v7, %s1120_s18 }
 0x317   : > { %487 = vrot.lane.b32.xlu1 %v1170_v13, %s1120_s18 }
 0x31b   : > { %587 = vrot.lane.b32.xlu1 %v1157_v6, %s1121_s19 }
 0x383   : > { %v379_v58 = vpop.xlane.xlu1 %378 }
 0x384   : > { %v382_v59 = vsub.f32 %v983_v51, %v379_v58 }
 0x386   : > { %v387_v60 = vmul.f32 1.442695, %v382_v59  ;;  %v376_v61 = vpop.xlane.xlu0 %375 }
 0x387   : > { %v381_v62 = vsub.f32 %v360_v55, %v376_v61  ;;  %v373_v63 = vpop.xlane.xlu1 %372 }
 0x388   : > { %v380_v0 = vsub.f32 %v357_v52, %v373_v63  ;;  %1063 = vpow2.f32 %v387_v60 }
 0x389   : > { %v385_v1 = vmul.f32 1.442695, %v381_v62 }
 0x38a   : > { %v383_v2 = vmul.f32 1.442695, %v380_v0  ;;  %v406_v4 = vpop.permute.xlu0 %405 }
 0x38b   : > { %1065 = vpow2.f32 %v385_v1  ;;  %v415_v5 = vand.u32 %v406_v4, %v1174_v16  ;;  %v490_v8 = vpop.permute.xlu1 %489 }
 0x38c   : > { %1067 = vpow2.f32 %v383_v2  ;;  %v500_v15 = vsel %vm134_vm0, %v490_v8, 0 }
 0x38d   : > { %987 = vmatprep.subr.bf16.mxu0 %v415_v5 }
 0x38e   : > { %988 = vmatpush3.bf16.msra.mxu0 %v415_v5 }
 0x38f   : > { %1029 = vmatprep.subr.msk.bf16.mxu0 %vm134_vm0, %v490_v8  ;;  %v492_v9 = vpop.permute.xlu1 %491 }
 0x390   : > { %v503_v19 = vsel %vm134_vm0, %v492_v9, 0 }
 0x392   : > { %v1223_v10 = vpop.eup %1063 }
 0x393   : > { %v402_v17 = vpack.c.bf16 %v1223_v10, %v1223_v10  ;;  %v486_v18 = vpop.permute.xlu1 %485 }
 0x395   : > { %v1225_v11 = vpop.eup %1065 }
 0x396   : > { %v1227_v12 = vpop.eup %1067 }
 0x397   : > { %v401_v14 = vpack.c.bf16 %v1225_v11, %v1227_v12  ;;  %v488_v20 = vpop.permute.xlu1 %487 }
 0x399   : > { %989 = vmatprep.mubr.msk.bf16.mxu0 %vm195_vm3, %v401_v14  ;;  %v392_v14 = vsel %vm195_vm3, %v1225_v11, 0.0 }
 0x39a   : > { %990 = vmatmul.mubr.msk.bf16.vlgmr.msra.gmra.mrb[4].mxu0 %vm195_vm3, %v402_v17 }
 0x39b   : > { %994 = vmatpush3.bf16.xpose.msra.mxu0 %v500_v15  ;;  %997 = vmatprep.mubr.msk.bf16.mxu0 %vm134_vm0, %v486_v18  ;;  %v588_v32 = vpop.permute.xlu1 %587  ;;  %v395_v15 = vsel %vm202_vm2, %v1223_v10, 0.0 }
 0x39c   : > { %1030 = vmatprep.subr.msk.bf16.mxu0 %vm134_vm0, %v492_v9  ;;  %v597_v45 = vand.u32 %v588_v32, %v1174_v16  ;;  %v389_v9 = vsel %vm195_vm3, %v1227_v12, 0.0 }
 0x3a3   : > { %996 = vmatpush3.bf16.xpose.msra.mxu0 %v503_v19 }
 0x3aa   : > { %998 = vmatmul.mubr.msk.bf16.vlgmr.msra.gmra.mrb[8].mxu0 %vm134_vm0, %v488_v20 }
 0x46d   : > { %v1240_v21 = vpop.f32.mrb[4].mxu0 }
 0x46e   : > { %v1242_v22 = vpop.f32.mrb[5].mxu0 }
 0x46f   : > { %v992_v23 = vpop.f32.mrb[6].mxu0 }
 0x470   : > { %v1244_v24 = vpop.f32.mrb[7].mxu0 }
 0x47d   : > { %v999_v25 = vpop.f32.mrb[8].mxu0 }
 0x47e   : > { %v539_v26 = vpop.f32.mrb[9].mxu0  ;;  %v559_v27 = vsel %vm202_vm2, %v999_v25, -inf }
 0x47f   : > { %560 = vmax.xlane.f32.xlu0 %v559_v27  ;;  %v1000_v28 = vpop.f32.mrb[10].mxu0  ;;  %v553_v31 = vsel %vm195_vm3, %v539_v26, -inf }
 0x480   : > { %v542_v29 = vpop.f32.mrb[11].mxu0 }
 0x481   : > { %v556_v30 = vsel %vm195_vm3, %v542_v29, -inf }
 0x482   : > { %557 = vmax.xlane.f32.xlu1 %v556_v30 }
 0x483   : > { %554 = vmax.xlane.f32.xlu0 %v553_v31 }
 0x493   : > { %671 = vrot.lane.b32.xlu1 %v1154_v3, %s1122_s20 }
 0x497   : > { %667 = vrot.lane.b32.xlu1 %v1159_v7, %s1123_s21 }
 0x499   : > { %585 = vrot.lane.b32.xlu0 %v1154_v3, %s1121_s19 }
 0x49d   : > { %673 = vrot.lane.b32.xlu0 %v1157_v6, %s1122_s20 }
 0x4a1   : > { %669 = vrot.lane.b32.xlu0 %v1170_v13, %s1123_s21 }
 0x50c   : > { %v561_v33 = vpop.xlane.xlu0 %560 }
 0x50d   : > { %v564_v34 = vsub.f32 %v999_v25, %v561_v33 }
 0x50f   : > { %v569_v35 = vmul.f32 1.442695, %v564_v34  ;;  %v558_v37 = vpop.xlane.xlu1 %557 }
 0x510   : > { %v563_v40 = vsub.f32 %v542_v29, %v558_v37  ;;  %v555_v41 = vpop.xlane.xlu0 %554 }
 0x511   : > { %v562_v42 = vsub.f32 %v539_v26, %v555_v41  ;;  %1069 = vpow2.f32 %v569_v35  ;;  %v218_v41 = vsel %vm195_vm3, %v1191_v39, 0.0 }
 0x512   : > { %v567_v43 = vmul.f32 1.442695, %v563_v40 }
 0x513   : > { %v565_v44 = vmul.f32 1.442695, %v562_v42  ;;  %v672_v13 = vpop.permute.xlu1 %671  ;;  %v221_v42 = vsel %vm202_vm2, %v1187_v36, 0.0 }
 0x514   : > { %1071 = vpow2.f32 %v567_v43  ;;  %v586_v7 = vpop.permute.xlu0 %585  ;;  %v682_v53 = vsel %vm134_vm0, %v672_v13, 0 }
 0x515   : > { %1073 = vpow2.f32 %v565_v44  ;;  %1001 = vmatprep.subr.bf16.mxu1 %v586_v7 }
 0x516   : > { %1002 = vmatpush3.bf16.msra.mxu1 %v586_v7 }
 0x517   : > { %1003 = vmatprep.subr.bf16.mxu1 %v597_v45  ;;  %v668_v55 = vpop.permute.xlu1 %667 }
 0x518   : > { %v674_v56 = vpop.permute.xlu0 %673 }
 0x519   : > { %v685_v57 = vsel %vm134_vm0, %v674_v56, 0 }
 0x51a   : > { %1004 = vmatpush3.bf16.msra.mxu1 %v597_v45 }
 0x51b   : > { %1031 = vmatprep.subr.msk.bf16.mxu1 %vm134_vm0, %v672_v13  ;;  %v1070_v46 = vpop.eup %1069 }
 0x51c   : > { %v584_v54 = vpack.c.bf16 %v1070_v46, %v1070_v46  ;;  %v670_v58 = vpop.permute.xlu0 %669 }
 0x51e   : > { %v1072_v49 = vpop.eup %1071 }
 0x51f   : > { %v1074_v51 = vpop.eup %1073  ;;  %v574_v18 = vsel %vm195_vm3, %v1072_v49, 0.0 }
 0x520   : > { %v583_v52 = vpack.c.bf16 %v1072_v49, %v1074_v51  ;;  %v571_v17 = vsel %vm195_vm3, %v1074_v51, 0.0 }
 0x522   : > { %1005 = vmatprep.mubr.msk.bf16.mxu1 %vm195_vm3, %v583_v52 }
 0x523   : > { %1006 = vmatmul.mubr.msk.bf16.vlgmr.msra.gmra.mrb[8].mxu1 %vm195_vm3, %v584_v54 }
 0x524   : > { %1010 = vmatpush3.bf16.xpose.msra.mxu1 %v682_v53  ;;  %1013 = vmatprep.mubr.msk.bf16.mxu1 %vm134_vm0, %v668_v55 }
 0x525   : > { %1032 = vmatprep.subr.msk.bf16.mxu1 %vm134_vm0, %v674_v56 }
 0x52c   : > { %1012 = vmatpush3.bf16.xpose.msra.mxu1 %v685_v57 }
 0x533   : > { %1014 = vmatmul.mubr.msk.bf16.vlgmr.msra.gmra.mrb[12].mxu1 %vm134_vm0, %v670_v58 }
 0x5f6   : > { %v1264_v59 = vpop.f32.mrb[8].mxu1 }
 0x5f7   : > { %v1266_v60 = vpop.f32.mrb[9].mxu1 }
 0x5f8   : > { %v1008_v61 = vpop.f32.mrb[10].mxu1 }
 0x5f9   : > { %v1268_v62 = vpop.f32.mrb[11].mxu1 }
 0x606   : > { %v1015_v63 = vpop.f32.mrb[12].mxu1 }
 0x607   : > { %v721_v0 = vpop.f32.mrb[13].mxu1  ;;  %v741_v1 = vsel %vm202_vm2, %v1015_v63, -inf }
 0x608   : > { %742 = vmax.xlane.f32.xlu0 %v741_v1  ;;  %v1016_v2 = vpop.f32.mrb[14].mxu1  ;;  %v735_v4 = vsel %vm195_vm3, %v721_v0, -inf }
 0x609   : > { %736 = vmax.xlane.f32.xlu1 %v735_v4  ;;  %v724_v5 = vpop.f32.mrb[15].mxu1 }
 0x60a   : > { %v738_v8 = vsel %vm195_vm3, %v724_v5, -inf }
 0x60c   : > { %739 = vmax.xlane.f32.xlu0 %v738_v8 }
 0x61a   : > { %767 = vrot.lane.b32.xlu1 %v1154_v3, %s1124_s22  ;;  %v577_v3 = vsel %vm202_vm2, %v1070_v46, 0.0 }
 0x622   : > { %769 = vrot.lane.b32.xlu0 %v1157_v6, %s1124_s22 }
 0x63e   : > { %390 = vadd.xlane.f32.xlu1 %v389_v9 }
 0x641   : > { %393 = vadd.xlane.f32.xlu0 %v392_v14 }
 0x642   : > { %396 = vadd.xlane.f32.xlu1 %v395_v15 }
 0x645   : > { %572 = vadd.xlane.f32.xlu0 %v571_v17 }
 0x646   : > { %575 = vadd.xlane.f32.xlu1 %v574_v18 }
 0x649   : > { %578 = vadd.xlane.f32.xlu0 %v577_v3 }
 0x695   : > { %v743_v6 = vpop.xlane.xlu0 %742 }
 0x696   : > { %v746_v12 = vsub.f32 %v1015_v63, %v743_v6  ;;  %v737_v19 = vpop.xlane.xlu1 %736 }
 0x697   : > { %v744_v20 = vsub.f32 %v721_v0, %v737_v19 }
 0x698   : > { %v751_v23 = vmul.f32 1.442695, %v746_v12 }
 0x699   : > { %v747_v11 = vmul.f32 1.442695, %v744_v20  ;;  %v740_v25 = vpop.xlane.xlu0 %739 }
 0x69a   : > { %v745_v26 = vsub.f32 %v724_v5, %v740_v25  ;;  %v768_v27 = vpop.permute.xlu1 %767 }
 0x69b   : > { %1075 = vpow2.f32 %v747_v11  ;;  %1017 = vmatprep.subr.bf16.mxu0 %v768_v27 }
 0x69c   : > { %v749_v10 = vmul.f32 1.442695, %v745_v26  ;;  %1018 = vmatpush3.bf16.msra.mxu0 %v768_v27  ;;  %1077 = vpow2.f32 %v751_v23 }
 0x69d   : > { %v770_v28 = vpop.permute.xlu0 %769 }
 0x69e   : > { %1079 = vpow2.f32 %v749_v10  ;;  %v779_v29 = vand.u32 %v770_v28, %v1174_v16  ;;  %v215_v16 = vsel %vm195_vm3, %v1189_v38, 0.0 }
 0x6a0   : > { %1019 = vmatprep.subr.bf16.mxu0 %v779_v29 }
 0x6a1   : > { %1020 = vmatpush3.bf16.msra.mxu0 %v779_v29 }
 0x6a5   : > { %v1076_v30 = vpop.eup %1075 }
 0x6a6   : > { %v753_v31 = vsel %vm195_vm3, %v1076_v30, 0.0  ;;  %v1078_v32 = vpop.eup %1077 }
 0x6a7   : > { %754 = vadd.xlane.f32.xlu1 %v753_v31  ;;  %v759_v37 = vsel %vm202_vm2, %v1078_v32, 0.0  ;;  %v766_v40 = vpack.c.bf16 %v1078_v32, %v1078_v32 }
 0x6a8   : > { %v1080_v33 = vpop.eup %1079 }
 0x6a9   : > { %v756_v34 = vsel %vm195_vm3, %v1080_v33, 0.0  ;;  %v765_v35 = vpack.c.bf16 %v1080_v33, %v1076_v30 }
 0x6aa   : > { %757 = vadd.xlane.f32.xlu0 %v756_v34 }
 0x6ab   : > { %760 = vadd.xlane.f32.xlu1 %v759_v37  ;;  %1021 = vmatprep.mubr.msk.bf16.mxu0 %vm195_vm3, %v765_v35 }
 0x6ac   : > { %1022 = vmatmul.mubr.msk.bf16.vlgmr.msra.gmra.mrb[12].mxu0 %vm195_vm3, %v766_v40 }
 0x6ae   : > { %216 = vadd.xlane.f32.xlu0 %v215_v16 }
 0x6af   : > { %219 = vadd.xlane.f32.xlu1 %v218_v41 }
 0x6b2   : > { %222 = vadd.xlane.f32.xlu0 %v221_v42 }
 0x6cb   : > { %v391_v43 = vpop.xlane.xlu1 %390 }
 0x6cc   : > { %1081 = vrcp.f32 %v391_v43 }
 0x6ce   : > { %v394_v44 = vpop.xlane.xlu0 %393 }
 0x6cf   : > { %1083 = vrcp.f32 %v394_v44  ;;  %v397_v7 = vpop.xlane.xlu1 %396 }
 0x6d0   : > { %1085 = vrcp.f32 %v397_v7 }
 0x6d2   : > { %v573_v45 = vpop.xlane.xlu0 %572 }
 0x6d3   : > { %1087 = vrcp.f32 %v573_v45  ;;  %v576_v13 = vpop.xlane.xlu1 %575 }
 0x6d4   : > { %1089 = vrcp.f32 %v576_v13 }
 0x6d6   : > { %v1082_v38 = vpop.eup %1081  ;;  %v579_v46 = vpop.xlane.xlu0 %578 }
 0x6d7   : > { %1091 = vrcp.f32 %v579_v46  ;;  %v465_v39 = vmul.f32 %v1082_v38, %v1242_v22 }
 0x6d9   : > { %v1084_v49 = vpop.eup %1083  ;;  %471 = vrot.lane.b32.xlu1 %v465_v39, %s1125_s23 }
 0x6da   : > { %v1086_v36 = vpop.eup %1085  ;;  %v466_v51 = vmul.f32 %v1084_v49, %v1244_v24 }
 0x6db   : > { %v467_v52 = vmul.f32 %v1086_v36, %v1240_v21 }
 0x6dc   : > { %473 = vrot.lane.b32.xlu0 %v466_v51, %s1125_s23 }
 0x6dd   : > { %v1088_v53 = vpop.eup %1087  ;;  %475 = vrot.lane.b32.xlu1 %v467_v52, %s1125_s23 }
 0x6de   : > { %v1090_v54 = vpop.eup %1089  ;;  %v647_v55 = vmul.f32 %v1088_v53, %v1266_v60 }
 0x6df   : > { %v648_v56 = vmul.f32 %v1090_v54, %v1268_v62 }
 0x6e1   : > { %v1092_v57 = vpop.eup %1091  ;;  %655 = vrot.lane.b32.xlu0 %v648_v56, %s1126_s24  ;;  %653 = vrot.lane.b32.xlu1 %v647_v55, %s1126_s24 }
 0x6e2   : > { %v649_v22 = vmul.f32 %v1092_v57, %v1264_v59 }
 0x6e5   : > { %657 = vrot.lane.b32.xlu1 %v649_v22, %s1126_s24 }
 0x734   : > { %v755_v58 = vpop.xlane.xlu1 %754 }
 0x737   : > { %v758_v24 = vpop.xlane.xlu0 %757 }
 0x738   : > { %v761_v61 = vpop.xlane.xlu1 %760 }
 0x73b   : > { %v217_v21 = vpop.xlane.xlu0 %216 }
 0x73c   : > { %1093 = vrcp.f32 %v217_v21  ;;  %v220_v63 = vpop.xlane.xlu1 %219 }
 0x73d   : > { %1095 = vrcp.f32 %v220_v63 }
 0x73f   : > { %v223_v0 = vpop.xlane.xlu0 %222 }
 0x740   : > { %1097 = vrcp.f32 %v223_v0 }
 0x741   : > { %1099 = vrcp.f32 %v761_v61 }
 0x742   : > { %1101 = vrcp.f32 %v755_v58 }
 0x743   : > { %1103 = vrcp.f32 %v758_v24 }
 0x746   : > { %v1094_v60 = vpop.eup %1093 }
 0x747   : > { %v1096_v59 = vpop.eup %1095  ;;  %v294_v62 = vmul.f32 %v1094_v60, %v1206_v48 }
 0x748   : > { %v295_v1 = vmul.f32 %v1096_v59, %v1208_v50 }
 0x749   : > { %297 = vst.msk [vmem:[%s1307_s27] sm:$0xff] %vm134_vm0, %v294_v62 }
 0x74a   : > { %v1098_v2 = vpop.eup %1097  ;;  %298 = vst.msk [vmem:[%s1307_s27 + $0x8] sm:$0xff] %vm134_vm0, %v295_v1 }
 0x74b   : > { %v296_v4 = vmul.f32 %v1098_v2, %v1204_v47  ;;  %v472_v5 = vpop.permute.xlu1 %471  ;;  %v1100_v47 = vpop.eup %1099 }
 0x74c   : > { %481 = vst.msk [vmem:[%s1307_s27] sm:$0xff] %vm480_vm4, %v472_v5  ;;  %v1102_v17 = vpop.eup %1101 }
 0x74d   : > { %300 = vst.msk [vmem:[%s1307_s27 + $0x10] sm:$0x1] %vm299_vm5, %v296_v4  ;;  %v1104_v19 = vpop.eup %1103 }
 0x74e   : > { %v474_v8 = vpop.permute.xlu0 %473 }
 0x74f   : > { %482 = vst.msk [vmem:[%s1307_s27 + $0x8] sm:$0xff] %vm480_vm4, %v474_v8  ;;  %v476_v48 = vpop.permute.xlu1 %475 }
 0x750   : > { %484 = vst.msk [vmem:[%s1307_s27 + $0x10] sm:$0x1] %vm483_vm6, %v476_v48 }
 0x753   : > { %v654_v50 = vpop.permute.xlu1 %653  ;;  %v656_v9 = vpop.permute.xlu0 %655 }
 0x754   : > { %663 = vst.msk [vmem:[%s1307_s27] sm:$0xff] %vm662_vm7, %v654_v50  ;;  %664 = vst.msk [vmem:[%s1307_s27 + $0x8] sm:$0xff] %vm662_vm7, %v656_v9 }
 0x757   : > { %v658_v14 = vpop.permute.xlu1 %657 }
 0x758   : > { %666 = vst.msk [vmem:[%s1307_s27 + $0x10] sm:$0x1] %vm665_vm8, %v658_v14 }
 0x77f   : > { %v1023_v15 = vpop.f32.mrb[12].mxu0 }
 0x780   : > { %v831_v18 = vmul.f32 %v1100_v47, %v1023_v15  ;;  %v815_v3 = vpop.f32.mrb[13].mxu0 }
 0x781   : > { %v829_v6 = vmul.f32 %v1102_v17, %v815_v3  ;;  %v1024_v12 = vpop.f32.mrb[14].mxu0 }
 0x782   : > { %v818_v20 = vpop.f32.mrb[15].mxu0 }
 0x783   : > { %v830_v23 = vmul.f32 %v1104_v19, %v818_v20  ;;  %835 = vrot.lane.b32.xlu0 %v829_v6, %s1127_s28 }
 0x785   : > { %837 = vrot.lane.b32.xlu1 %v830_v23, %s1127_s28 }
 0x787   : > { %839 = vrot.lane.b32.xlu0 %v831_v18, %s1127_s28 }
 0x7f5   : > { %v836_v11 = vpop.permute.xlu0 %835 }
 0x7f6   : > { %845 = vst.msk [vmem:[%s1307_s27] sm:$0xff] %vm844_vm9, %v836_v11 }
 0x7f7   : > { %v838_v25 = vpop.permute.xlu1 %837 }
 0x7f8   : > { %846 = vst.msk [vmem:[%s1307_s27 + $0x8] sm:$0xff] %vm844_vm9, %v838_v25 }
 0x7f9   : > { %v840_v26 = vpop.permute.xlu0 %839 }
 0x7fa   : > { %848 = vst.msk [vmem:[%s1307_s27 + $0x10] sm:$0x1] %vm847_vm10, %v840_v26 }
 0x7fb PF: > { %s11_s6 = sadd.s32 1, %s1111_s6  }
 0x7fc   : > { %p8_p4 = scmp.ge.s32.totalorder %s11_s6, 4  }
 0x7fe   :  { %10 = sbr.rel (!%p8_p4) target bundleno = 1 (0x1), region = 54 }

// kernel: vit_forward.13
= control target key start
LH: loop header
LB: loop body
LE: loop exit
PB: predicated region body
PF: predicated region fallthrough
CT: control target
= control target key end

     0   :  { %vm22_vm0 = vcmask 261120   ;;  %v213_v0 = vmov 0.0   ;;  %vm214_vm1 = vmmov 0   ;;  %vm27_vm2 = vcmask 254976   ;;  %s317_s1 = inlined_call_operand.vmem [shape: bf16[32,32], index: 1, kind: input, shape index: {}]   ;;  %s318_s0 = inlined_call_operand.vmem [shape: f32[34,32], index: 0, kind: input, shape index: {}]   ;;  %s319_s2 = inlined_call_operand.vmem [shape: f32[1,32], index: 2, kind: input, shape index: {}]   ;;  %s320_s3 = inlined_call_operand.vmem [shape: f32[34,32], index: 3, kind: input, shape index: {}]   ;;  %s321_s4 = inlined_call_operand.vmem [shape: f32[34,32], index: 4, kind: output, shape index: {}]  }
   0x1   :  { %205 = vmatprep.subr.bf16.mxu1 %v213_v0  ;;  %v211_v1 = vld [vmem:[%s317_s1] sm:$0xff]   ;;  %23 = vst.msk [vmem:[#allocation2] sm:$0xff] %vm22_vm0, %v213_v0  ;;  %24 = vst.msk [vmem:[#allocation2 + $0x8] sm:$0xff] %vm22_vm0, %v213_v0  ;;  %189 = vmatprep.subr.bf16.mxu0 %v213_v0  ;;  %v212_v3 = vld [vmem:[%s317_s1 + $0x8] sm:$0xff]  }
   0x2   :  { %25 = vst.msk [vmem:[#allocation2 + $0x10] sm:$0xff] %vm22_vm0, %v213_v0  ;;  %26 = vst.msk [vmem:[#allocation2 + $0x18] sm:$0xff] %vm22_vm0, %v213_v0  ;;  %197 = vmatprep.mubr.msk.bf16.mxu1 %vm214_vm1, %v213_v0  ;;  %193 = vmatprep.mubr.msk.bf16.mxu0 %vm214_vm1, %v213_v0  ;;  %v67_v2 = vsel %vm22_vm0, %v211_v1, 0  ;;  %v70_v4 = vsel %vm22_vm0, %v212_v3, 0  ;;  %v36_v5 = vld [vmem:[%s318_s0 + $0x10] sm:$0xff]  ;;  %v37_v6 = vld [vmem:[%s318_s0 + $0x18] sm:$0xff] }
   0x3   :  { %207 = vmatpush3.bf16.xpose.msra.mxu1 %v67_v2  ;;  %190 = vmatpush3.bf16.xpose.msra.mxu0 %v67_v2  ;;  %v34_v7 = vld [vmem:[%s318_s0] sm:$0xff]  ;;  %v35_v8 = vld [vmem:[%s318_s0 + $0x8] sm:$0xff]  ;;  %v40_v9 = vpack.c.bf16 %v37_v6, %v36_v5  ;;  %28 = vst.msk [vmem:[#allocation2 + $0x20] sm:$0x3] %vm27_vm2, %v213_v0  ;;  %v161_v33 = vld [vmem:[%s320_s3 + $0x10] sm:$0xff] }
   0x4   :  { %206 = vmatprep.subr.bf16.mxu1 %v213_v0  ;;  %191 = vmatprep.subr.bf16.mxu0 %v213_v0  ;;  %v39_v10 = vpack.c.bf16 %v35_v8, %v34_v7  ;;  %v38_v11 = vld [vmem:[%s318_s0 + $0x20] sm:$0x3]  ;;  %v162_v41 = vld [vmem:[%s320_s3 + $0x18] sm:$0xff]  ;;  %v160_v45 = vld [vmem:[%s320_s3 + $0x8] sm:$0xff] }
   0x5   :  { %v41_v12 = vpack.c.bf16 %v38_v11, %v38_v11  ;;  %v183_v31 = vld [vmem:[%s319_s2] ss:$0 sm:$0xff] }
   0x6   :  { %v159_v37 = vld [vmem:[%s320_s3] sm:$0xff] }
   0x7   :  { %v163_v53 = vld [vmem:[%s320_s3 + $0x20] sm:$0x3] }
   0x8   :  { %v29_v14 = vld [vmem:[#allocation2] sm:$0xff]  ;;  %v30_v18 = vld [vmem:[#allocation2 + $0x8] sm:$0xff] }
   0x9   :  { %v31_v13 = vld [vmem:[#allocation2 + $0x10] sm:$0xff]  ;;  %v32_v16 = vld [vmem:[#allocation2 + $0x18] sm:$0xff] }
   0xa   :  { %v33_v29 = vld [vmem:[#allocation2 + $0x20] sm:$0x3] }
   0xb   :  { %208 = vmatpush3.bf16.xpose.msra.mxu1 %v70_v4  ;;  %192 = vmatpush3.bf16.xpose.msra.mxu0 %v70_v4 }
  0x12   :  { %198 = vmatmul.mubr.msk.bf16.vlgmr.msra.gmra.mrb[0].mxu1 %vm22_vm0, %v40_v9  ;;  %194 = vmatmul.mubr.msk.bf16.vlgmr.msra.gmra.mrb[0].mxu0 %vm22_vm0, %v39_v10 }
  0x13   :  { %201 = vmatprep.mubr.msk.bf16.mxu1 %vm214_vm1, %v213_v0 }
  0x1a   :  { %202 = vmatmul.mubr.msk.bf16.gmra.mrb[4].mxu1 %vm22_vm0, %v41_v12 }
  0xe5   :  { %v114_v15 = vpop.f32.mrb[0].mxu1  ;;  %v106_v17 = vpop.f32.mrb[0].mxu0 }
  0xe6   :  { %v130_v19 = vadd.f32 %v114_v15, %v31_v13  ;;  %v199_v20 = vpop.f32.mrb[1].mxu1  ;;  %v128_v21 = vadd.f32 %v106_v17, %v29_v14  ;;  %v195_v22 = vpop.f32.mrb[1].mxu0 }
  0xe7   :  { %v117_v23 = vpop.f32.mrb[2].mxu1  ;;  %v109_v24 = vpop.f32.mrb[2].mxu0 }
  0xe8   :  { %135 = vst.msk [vmem:[#allocation2 + $0x10] sm:$0xff] %vm22_vm0, %v130_v19  ;;  %v131_v25 = vadd.f32 %v117_v23, %v32_v16  ;;  %133 = vst.msk [vmem:[#allocation2] sm:$0xff] %vm22_vm0, %v128_v21  ;;  %v200_v26 = vpop.f32.mrb[3].mxu1  ;;  %v129_v27 = vadd.f32 %v109_v24, %v30_v18  ;;  %v196_v28 = vpop.f32.mrb[3].mxu0 }
  0xea   :  { %136 = vst.msk [vmem:[#allocation2 + $0x18] sm:$0xff] %vm22_vm0, %v131_v25  ;;  %134 = vst.msk [vmem:[#allocation2 + $0x8] sm:$0xff] %vm22_vm0, %v129_v27 }
  0xed   :  { %v122_v30 = vpop.f32.mrb[4].mxu1 }
  0xee   :  { %v132_v32 = vadd.f32 %v122_v30, %v33_v29  ;;  %v203_v34 = vpop.f32.mrb[5].mxu1 }
  0xef   :  { %v142_v35 = vld [vmem:[#allocation2] sm:$0xff]  ;;  %v144_v36 = vld [vmem:[#allocation2 + $0x10] sm:$0xff]  ;;  %v125_v38 = vpop.f32.mrb[6].mxu1 }
  0xf0   :  { %138 = vst.msk [vmem:[#allocation2 + $0x20] sm:$0x3] %vm27_vm2, %v132_v32  ;;  %v154_v39 = vadd.f32 %v183_v31, %v142_v35  ;;  %v156_v40 = vadd.f32 %v183_v31, %v144_v36  ;;  %v204_v42 = vpop.f32.mrb[7].mxu1 }
  0xf1   :  { %v143_v43 = vld [vmem:[#allocation2 + $0x8] sm:$0xff]  ;;  %v145_v44 = vld [vmem:[#allocation2 + $0x18] sm:$0xff] }
  0xf2   :  { %v155_v46 = vadd.f32 %v183_v31, %v143_v43  ;;  %v157_v47 = vadd.f32 %v183_v31, %v145_v44  ;;  %v164_v48 = vadd.f32 %v159_v37, %v154_v39  ;;  %v166_v49 = vadd.f32 %v161_v33, %v156_v40 }
  0xf4   :  { %v165_v50 = vadd.f32 %v160_v45, %v155_v46  ;;  %v167_v51 = vadd.f32 %v162_v41, %v157_v47  ;;  %169 = vst.msk [vmem:[%s321_s4] sm:$0xff] %vm22_vm0, %v164_v48  ;;  %171 = vst.msk [vmem:[%s321_s4 + $0x10] sm:$0xff] %vm22_vm0, %v166_v49 }
  0xf6   :  { %170 = vst.msk [vmem:[%s321_s4 + $0x8] sm:$0xff] %vm22_vm0, %v165_v50  ;;  %172 = vst.msk [vmem:[%s321_s4 + $0x18] sm:$0xff] %vm22_vm0, %v167_v51 }
  0xf7   :  { %v146_v52 = vld [vmem:[#allocation2 + $0x20] sm:$0x3] }
  0xf8   :  { %v158_v54 = vadd.f32 %v183_v31, %v146_v52 }
  0xfa   :  { %v168_v55 = vadd.f32 %v163_v53, %v158_v54 }
  0xfc   :  { %173 = vst.msk [vmem:[%s321_s4 + $0x20] sm:$0x3] %vm27_vm2, %v168_v55 }

// kernel: vit_forward.19
= control target key start
LH: loop header
LB: loop body
LE: loop exit
PB: predicated region body
PF: predicated region fallthrough
CT: control target
= control target key end

     0   :  { %vm25_vm0 = vcmask 254976   ;;  %s237_s0 = inlined_call_operand.vmem [shape: f32[2,32], index: 0, kind: input, shape index: {}]   ;;  %s238_s1 = inlined_call_operand.vmem [shape: f32[1,32], index: 1, kind: input, shape index: {}]   ;;  %s239_s2 = inlined_call_operand.vmem [shape: f32[1,32], index: 2, kind: input, shape index: {}]   ;;  %s240_s3 = inlined_call_operand.vmem [shape: bf16[10,32], index: 3, kind: input, shape index: {}]   ;;  %s241_s4 = inlined_call_operand.vmem [shape: f32[1,10], index: 4, kind: input, shape index: {}]   ;;  %s242_s5 = inlined_call_operand.hbm [shape: f32[2,10], index: 5, kind: output, shape index: {}]  }
   0x1   :  { %v22_v0 = vld [vmem:[%s237_s0] sm:$0x3] }
   0x2   :  { %v26_v1 = vsel %vm25_vm0, %v22_v0, 0.0 }
   0x3   :  { %10 = vsyncpa [#allocation3], 0  ;;  %27 = vadd.xlane.f32.xlu0 %v26_v1  ;;  %v148_v7 = vld [vmem:[%s240_s3] sm:$0x1f]   ;;  %vm69_vm1 = vcmask 261120   ;;  %v175_v8 = vmov 0.0  }
   0x4   :  { %139 = vmatprep.subr.bf16.mxu0 %v175_v8  ;;  %v74_v9 = vsel %vm69_vm1, %v148_v7, 0  ;;  %vm176_vm2 = vmmov 0   ;;  %v132_v14 = vld [vmem:[%s238_s1] ss:$0 sm:$0xff]  ;;  %s177_s26 = smov [#allocation2]   ;;  %vm116_vm3 = vcmask 74752  }
   0x5   :  { %140 = vmatpush3.bf16.xpose.msra.mxu0 %v74_v9  ;;  %141 = vmatprep.mubr.msk.bf16.mxu0 %vm176_vm2, %v175_v8  ;;  %v133_v16 = vld [vmem:[%s239_s2] ss:$0 sm:$0xff]  ;;  %s124_s27 = sshll.u32 %s177_s26, 4  ;;  %s125_s27 = int_to_ptr.vmem [resolvable:$true] %s124_s27 }
   0x6   :  { %v134_v20 = vld [vmem:[%s241_s4] ss:$0 sm:$0xff]  ;;  %s151_s1 = scalar_lea.vmem %s125_s27, 32  ;;  %p156_p1 = scmp.lt.s32.totalorder %s125_s27, %s125_s27 }
   0x7   :  { %p152_p0 = scmp.ne.s32.totalorder %s125_s27, %s151_s1  ;;  %p157_p2 = scmp.lt.s32.totalorder %s151_s1, %s151_s1 }
   0x9   :  { %p158_p3 = por %p157_p2, %p156_p1 }
   0xb   :  { %p159_p4 = pnand %p158_p3, %p152_p0 }
  0x90   :  { %v28_v2 = vpop.xlane.xlu0 %27 }
  0x91   :  { %v30_v3 = vmul.f32 0.03125, %v28_v2 }
  0x93   :  { %v31_v4 = vsub.f32 %v22_v0, %v30_v3 }
  0x95   :  { %v32_v5 = vmul.f32 %v31_v4, %v31_v4 }
  0x97   :  { %v33_v6 = vsel %vm25_vm0, %v32_v5, 0.0 }
  0x98   :  { %34 = vadd.xlane.f32.xlu0 %v33_v6 }
 0x125   :  { %v35_v10 = vpop.xlane.xlu0 %34 }
 0x126   :  { %v36_v11 = vmul.f32 0.03125, %v35_v10 }
 0x128   :  { %v37_v12 = vadd.f32 1e-05, %v36_v11 }
 0x12a   :  { %149 = vrsqrt.f32 %v37_v12 }
 0x134   :  { %v150_v13 = vpop.eup %149 }
 0x135   :  { %v39_v15 = vmul.f32 %v150_v13, %v31_v4 }
 0x137   :  { %v46_v17 = vmul.f32 %v132_v14, %v39_v15 }
 0x139   :  { %v53_v18 = vadd.f32 %v133_v16, %v46_v17 }
 0x13b   :  { %v54_v19 = vpack.c.bf16 %v53_v18, %v53_v18 }
 0x13d   :  { %142 = vmatmul.mubr.msk.bf16.vlgmr.msra.gmra.mrb[0].mxu0 %vm69_vm1, %v54_v19 }
 0x210   :  { %v110_v21 = vpop.f32.mrb[0].mxu0 }
 0x211   :  { %v111_v22 = vadd.f32 %v134_v20, %v110_v21  ;;  %v143_v23 = vpop.f32.mrb[1].mxu0 }
 0x212   :  { %v113_v24 = vpop.f32.mrb[2].mxu0 }
 0x213   :  { %v144_v25 = vpop.f32.mrb[3].mxu0  ;;  %117 = vst.msk [vmem:[#allocation2] sm:$0x3] %vm116_vm3, %v111_v22 }
 0x214   :  { %162 = shalt.err (!%p159_p4)
}
 0x215   :  { %s163_s4 = scalar_lea.hbm %s242_s5, 32 }
 0x216   :  { %p164_p5 = scmp.ne.s32.totalorder %s242_s5, %s163_s4  ;;  %p167_p6 = scmp.lt.u32.totalorder %s163_s4, %s242_s5 }
 0x218   :  { %p169_p7 = pnand %p167_p6, %p164_p5 }
 0x21a   :  { %172 = shalt.err (!%p169_p7)
}
 0x21b   :  { %127 = dma.vmem_to_hbm [thread:$0]  %s125_s27, 32, %s242_s5, [#allocation3]  }
 0x21c   :  { %173 = dma.done.wait [#allocation3], 32  }
 0x21d   :  { %174 = vsyncadd [#allocation3], 4294967264 }
 0x21e   :  { %131 = vsyncpa [#allocation3], 1 }

// kernel: vit_forward.14
= control target key start
LH: loop header
LB: loop body
LE: loop exit
PB: predicated region body
PF: predicated region fallthrough
CT: control target
= control target key end

     0   :  { %vm34_vm0 = vcmask 261120   ;;  %vm47_vm1 = vcmask 254976   ;;  %v596_v10 = vmov 0.0   ;;  %vm597_vm2 = vmmov 0   ;;  %s888_s0 = inlined_call_operand.vmem [shape: f32[34,32], index: 0, kind: input, shape index: {}]   ;;  %s889_s3 = inlined_call_operand.vmem [shape: bf16[64,32], index: 3, kind: input, shape index: {}]   ;;  %s890_s1 = inlined_call_operand.vmem [shape: f32[1,32], index: 1, kind: input, shape index: {}]   ;;  %s891_s2 = inlined_call_operand.vmem [shape: f32[1,32], index: 2, kind: input, shape index: {}]   ;;  %s892_s5 = inlined_call_operand.vmem [shape: bf16[32,64], index: 5, kind: input, shape index: {}]   ;;  %s893_s4 = inlined_call_operand.vmem [shape: f32[1,64], index: 4, kind: input, shape index: {}]   ;;  %s894_s6 = inlined_call_operand.vmem [shape: f32[1,32], index: 6, kind: input, shape index: {}]   ;;  %s895_s7 = inlined_call_operand.vmem [shape: f32[34,32], index: 7, kind: output, shape index: {}]  }
   0x1   :  { %v641_v0 = vld [vmem:[%s888_s0] sm:$0xff]  ;;  %v646_v1 = vld [vmem:[%s888_s0 + $0x10] sm:$0xff]  ;;  %v651_v2 = vld [vmem:[%s888_s0 + $0x8] sm:$0xff]  ;;  %532 = vmatprep.subr.bf16.mxu0 %v596_v10  ;;  %552 = vmatprep.subr.bf16.mxu1 %v596_v10  ;;  %vm413_vm3 = vcmask 523264  }
   0x2   :  { %v35_v3 = vsel %vm34_vm0, %v641_v0, 0.0  ;;  %v41_v4 = vsel %vm34_vm0, %v646_v1, 0.0  ;;  %v660_v5 = vld [vmem:[%s888_s0 + $0x18] sm:$0xff]  ;;  %v38_v6 = vsel %vm34_vm0, %v651_v2, 0.0  ;;  %v669_v8 = vld [vmem:[%s888_s0 + $0x20] sm:$0x3]  ;;  %540 = vmatprep.mubr.msk.bf16.mxu0 %vm597_vm2, %v596_v10  ;;  %556 = vmatprep.mubr.msk.bf16.mxu1 %vm597_vm2, %v596_v10 }
   0x3   :  { %36 = vadd.xlane.f32.xlu0 %v35_v3  ;;  %42 = vadd.xlane.f32.xlu1 %v41_v4  ;;  %v44_v7 = vsel %vm34_vm0, %v660_v5, 0.0  ;;  %v48_v9 = vsel %vm47_vm1, %v669_v8, 0.0  ;;  %v570_v11 = vld [vmem:[%s889_s3] sm:$0xff]   ;;  %v571_v38 = vld [vmem:[%s889_s3 + $0x8] sm:$0xff]   ;;  %v572_v40 = vld [vmem:[%s889_s3 + $0x10] sm:$0xff]  }
   0x4   :  { %v172_v12 = vsel %vm34_vm0, %v570_v11, 0  ;;  %v175_v39 = vsel %vm34_vm0, %v571_v38, 0  ;;  %v178_v41 = vsel %vm34_vm0, %v572_v40, 0  ;;  %v573_v42 = vld [vmem:[%s889_s3 + $0x18] sm:$0xff]   ;;  %v499_v61 = vld [vmem:[%s890_s1] ss:$0 sm:$0xff] }
   0x5   :  { %533 = vmatpush3.bf16.xpose.msra.mxu0 %v172_v12  ;;  %v181_v43 = vsel %vm34_vm0, %v573_v42, 0 }
   0x6   :  { %534 = vmatprep.subr.bf16.mxu0 %v596_v10 }
   0x7   :  { %39 = vadd.xlane.f32.xlu0 %v38_v6  ;;  %45 = vadd.xlane.f32.xlu1 %v44_v7  ;;  %v500_v6 = vld [vmem:[%s891_s2] ss:$0 sm:$0xff] }
   0xb   :  { %49 = vadd.xlane.f32.xlu0 %v48_v9 }
   0xd   :  { %535 = vmatpush3.bf16.xpose.msra.mxu0 %v175_v39 }
   0xe   :  { %536 = vmatprep.subr.bf16.mxu0 %v596_v10 }
  0x15   :  { %537 = vmatpush3.bf16.xpose.msra.mxu0 %v178_v41 }
  0x16   :  { %538 = vmatprep.subr.bf16.mxu0 %v596_v10 }
  0x1d   :  { %539 = vmatpush3.bf16.xpose.msra.mxu0 %v181_v43 }
  0x90   :  { %v37_v13 = vpop.xlane.xlu0 %36  ;;  %v43_v14 = vpop.xlane.xlu1 %42 }
  0x91   :  { %v52_v15 = vmul.f32 0.03125, %v37_v13  ;;  %v54_v16 = vmul.f32 0.03125, %v43_v14 }
  0x93   :  { %v57_v17 = vsub.f32 %v641_v0, %v52_v15  ;;  %v682_v18 = vsub.f32 %v646_v1, %v54_v16 }
  0x94   :  { %v40_v19 = vpop.xlane.xlu0 %39  ;;  %v46_v20 = vpop.xlane.xlu1 %45 }
  0x95   :  { %v53_v21 = vmul.f32 0.03125, %v40_v19  ;;  %v55_v22 = vmul.f32 0.03125, %v46_v20  ;;  %v62_v23 = vmul.f32 %v57_v17, %v57_v17  ;;  %v64_v24 = vmul.f32 %v682_v18, %v682_v18 }
  0x97   :  { %v58_v25 = vsub.f32 %v651_v2, %v53_v21  ;;  %v688_v26 = vsub.f32 %v660_v5, %v55_v22  ;;  %v67_v27 = vsel %vm34_vm0, %v62_v23, 0.0  ;;  %v73_v30 = vsel %vm34_vm0, %v64_v24, 0.0 }
  0x98   :  { %68 = vadd.xlane.f32.xlu1 %v67_v27  ;;  %v50_v28 = vpop.xlane.xlu0 %49 }
  0x99   :  { %v56_v29 = vmul.f32 0.03125, %v50_v28  ;;  %v63_v31 = vmul.f32 %v58_v25, %v58_v25  ;;  %v65_v32 = vmul.f32 %v688_v26, %v688_v26  ;;  %v575_v28 = vld [vmem:[%s892_s5 + $0x8] sm:$0xff]  }
  0x9b   :  { %v695_v33 = vsub.f32 %v669_v8, %v56_v29  ;;  %v70_v34 = vsel %vm34_vm0, %v63_v31, 0.0  ;;  %v76_v35 = vsel %vm34_vm0, %v65_v32, 0.0  ;;  %v427_v29 = vsel %vm413_vm3, %v575_v28, 0 }
  0x9c   :  { %74 = vadd.xlane.f32.xlu1 %v73_v30  ;;  %71 = vadd.xlane.f32.xlu0 %v70_v34  ;;  %v501_v30 = vld [vmem:[%s893_s4] ss:$0 sm:$0xff] }
  0x9d   :  { %v66_v36 = vmul.f32 %v695_v33, %v695_v33 }
  0x9f   :  { %v79_v37 = vsel %vm47_vm1, %v66_v36, 0.0 }
  0xa0   :  { %77 = vadd.xlane.f32.xlu0 %v76_v35  ;;  %80 = vadd.xlane.f32.xlu1 %v79_v37 }
 0x125   :  { %v69_v44 = vpop.xlane.xlu1 %68 }
 0x126   :  { %v82_v45 = vmul.f32 0.03125, %v69_v44 }
 0x128   :  { %v87_v46 = vadd.f32 1e-05, %v82_v45 }
 0x129   :  { %v75_v47 = vpop.xlane.xlu1 %74  ;;  %v72_v48 = vpop.xlane.xlu0 %71 }
 0x12a   :  { %576 = vrsqrt.f32 %v87_v46  ;;  %v84_v49 = vmul.f32 0.03125, %v75_v47  ;;  %v83_v50 = vmul.f32 0.03125, %v72_v48 }
 0x12c   :  { %v88_v51 = vadd.f32 1e-05, %v83_v50  ;;  %v89_v52 = vadd.f32 1e-05, %v84_v49 }
 0x12d   :  { %v81_v53 = vpop.xlane.xlu1 %80  ;;  %v78_v54 = vpop.xlane.xlu0 %77 }
 0x12e   :  { %v85_v55 = vmul.f32 0.03125, %v78_v54  ;;  %578 = vrsqrt.f32 %v88_v51  ;;  %v86_v56 = vmul.f32 0.03125, %v81_v53 }
 0x12f   :  { %580 = vrsqrt.f32 %v89_v52 }
 0x130   :  { %v90_v57 = vadd.f32 1e-05, %v85_v55  ;;  %v91_v58 = vadd.f32 1e-05, %v86_v56 }
 0x132   :  { %582 = vrsqrt.f32 %v90_v57 }
 0x133   :  { %584 = vrsqrt.f32 %v91_v58 }
 0x134   :  { %v577_v59 = vpop.eup %576 }
 0x135   :  { %v97_v60 = vmul.f32 %v577_v59, %v57_v17 }
 0x137   :  { %v108_v3 = vmul.f32 %v499_v61, %v97_v60 }
 0x138   :  { %v579_v62 = vpop.eup %578 }
 0x139   :  { %v98_v63 = vmul.f32 %v579_v62, %v58_v25  ;;  %v581_v4 = vpop.eup %580  ;;  %v119_v13 = vadd.f32 %v500_v6, %v108_v3 }
 0x13a   :  { %v99_v11 = vmul.f32 %v581_v4, %v682_v18 }
 0x13b   :  { %v109_v7 = vmul.f32 %v499_v61, %v98_v63 }
 0x13c   :  { %v583_v9 = vpop.eup %582  ;;  %v110_v19 = vmul.f32 %v499_v61, %v99_v11 }
 0x13d   :  { %v100_v12 = vmul.f32 %v583_v9, %v688_v26  ;;  %v120_v14 = vadd.f32 %v500_v6, %v109_v7  ;;  %v585_v17 = vpop.eup %584  ;;  %v574_v26 = vld [vmem:[%s892_s5] sm:$0xff]  }
 0x13e   :  { %v101_v20 = vmul.f32 %v585_v17, %v695_v33  ;;  %v121_v22 = vadd.f32 %v500_v6, %v110_v19  ;;  %v424_v27 = vsel %vm413_vm3, %v574_v26, 0 }
 0x13f   :  { %v124_v15 = vpack.c.bf16 %v120_v14, %v119_v13  ;;  %v111_v16 = vmul.f32 %v499_v61, %v100_v12  ;;  %553 = vmatpush3.bf16.xpose.msra.mxu1 %v424_v27 }
 0x140   :  { %v112_v24 = vmul.f32 %v499_v61, %v101_v20  ;;  %554 = vmatprep.subr.bf16.mxu1 %v596_v10 }
 0x141   :  { %541 = vmatmul.mubr.msk.bf16.vlgmr.msra.gmra.mrb[0].mxu0 %vm34_vm0, %v124_v15  ;;  %v122_v21 = vadd.f32 %v500_v6, %v111_v16 }
 0x142   :  { %544 = vmatprep.mubr.msk.bf16.mxu0 %vm597_vm2, %v596_v10  ;;  %v123_v18 = vadd.f32 %v500_v6, %v112_v24 }
 0x143   :  { %v125_v23 = vpack.c.bf16 %v122_v21, %v121_v22 }
 0x144   :  { %v126_v25 = vpack.c.bf16 %v123_v18, %v123_v18 }
 0x147   :  { %555 = vmatpush3.bf16.xpose.msra.mxu1 %v427_v29 }
 0x149   :  { %545 = vmatmul.mubr.msk.bf16.gmra.mrb[4].mxu0 %vm34_vm0, %v125_v23 }
 0x14a   :  { %548 = vmatprep.mubr.msk.bf16.mxu0 %vm597_vm2, %v596_v10 }
 0x151   :  { %549 = vmatmul.mubr.msk.bf16.gmra.mrb[8].mxu0 %vm34_vm0, %v126_v25 }
 0x214   :  { %v217_v31 = vpop.f32.mrb[0].mxu0 }
 0x215   :  { %v748_v32 = vadd.f32 %v501_v30, %v217_v31  ;;  %v542_v33 = vpop.f32.mrb[1].mxu0 }
 0x216   :  { %v220_v34 = vpop.f32.mrb[2].mxu0 }
 0x217   :  { %v244_v35 = vmul.f32 0.70710677, %v748_v32  ;;  %v751_v36 = vadd.f32 %v501_v30, %v220_v34  ;;  %v543_v37 = vpop.f32.mrb[3].mxu0 }
 0x219   :  { %v753_v38 = vclamps-f32 %v244_v35, 4.0  ;;  %v245_v39 = vmul.f32 0.70710677, %v751_v36 }
 0x21b   :  { %v758_v40 = vmul.f32 %v753_v38, %v753_v38  ;;  %v760_v41 = vclamps-f32 %v245_v39, 4.0 }
 0x21c   :  { %v225_v42 = vpop.f32.mrb[4].mxu0 }
 0x21d   :  { %v264_v43 = vmul.f32 -2.7261424e-10, %v758_v40  ;;  %v324_v44 = vmul.f32 -1.45660715e-05, %v758_v40  ;;  %v766_v45 = vmul.f32 %v760_v41, %v760_v41  ;;  %v768_v46 = vadd.f32 %v501_v30, %v225_v42  ;;  %v546_v47 = vpop.f32.mrb[5].mxu0 }
 0x21e   :  { %v228_v48 = vpop.f32.mrb[6].mxu0 }
 0x21f   :  { %v269_v49 = vadd.f32 2.7706815e-08, %v264_v43  ;;  %v329_v50 = vadd.f32 -0.00021337405, %v324_v44  ;;  %v265_v51 = vmul.f32 -2.7261424e-10, %v766_v45  ;;  %v771_v52 = vadd.f32 %v501_v30, %v228_v48 }
 0x220   :  { %v325_v53 = vmul.f32 -1.45660715e-05, %v766_v45  ;;  %v246_v54 = vmul.f32 0.70710677, %v768_v46  ;;  %v547_v55 = vpop.f32.mrb[7].mxu0 }
 0x221   :  { %v274_v56 = vmul.f32 %v269_v49, %v758_v40  ;;  %v334_v57 = vmul.f32 %v329_v50, %v758_v40  ;;  %v270_v58 = vadd.f32 2.7706815e-08, %v265_v51  ;;  %v247_v61 = vmul.f32 0.70710677, %v771_v52 }
 0x222   :  { %v330_v59 = vadd.f32 -0.00021337405, %v325_v53  ;;  %v777_v60 = vclamps-f32 %v246_v54, 4.0 }
 0x223   :  { %v279_v62 = vadd.f32 -2.101024e-06, %v274_v56  ;;  %v339_v63 = vadd.f32 -0.001682827, %v334_v57  ;;  %v275_v3 = vmul.f32 %v270_v58, %v766_v45  ;;  %v786_v7 = vclamps-f32 %v247_v61, 4.0 }
 0x224   :  { %v335_v4 = vmul.f32 %v330_v59, %v766_v45  ;;  %v784_v6 = vmul.f32 %v777_v60, %v777_v60  ;;  %v233_v9 = vpop.f32.mrb[8].mxu0 }
 0x225   :  { %v284_v11 = vmul.f32 %v279_v62, %v758_v40  ;;  %v344_v12 = vmul.f32 %v339_v63, %v758_v40  ;;  %v280_v13 = vadd.f32 -2.101024e-06, %v275_v3  ;;  %v550_v14 = vpop.f32.mrb[9].mxu0  ;;  %v794_v19 = vmul.f32 %v786_v7, %v786_v7 }
 0x226   :  { %v340_v15 = vadd.f32 -0.001682827, %v335_v4  ;;  %v266_v16 = vmul.f32 -2.7261424e-10, %v784_v6  ;;  %v326_v17 = vmul.f32 -1.45660715e-05, %v784_v6  ;;  %v797_v23 = vadd.f32 %v501_v30, %v233_v9 }
 0x227   :  { %v289_v20 = vadd.f32 -5.6925062e-05, %v284_v11  ;;  %v349_v21 = vadd.f32 -0.0073733293, %v344_v12  ;;  %v285_v22 = vmul.f32 %v280_v13, %v766_v45  ;;  %v236_v24 = vpop.f32.mrb[10].mxu0 }
 0x228   :  { %v345_v18 = vmul.f32 %v340_v15, %v766_v45  ;;  %v271_v25 = vadd.f32 2.7706815e-08, %v266_v16  ;;  %v331_v26 = vadd.f32 -0.00021337405, %v326_v17  ;;  %v267_v27 = vmul.f32 -2.7261424e-10, %v794_v19 }
 0x229   :  { %v294_v28 = vmul.f32 %v289_v20, %v758_v40  ;;  %v354_v29 = vmul.f32 %v349_v21, %v758_v40  ;;  %v290_v31 = vadd.f32 -5.6925062e-05, %v285_v22  ;;  %v327_v33 = vmul.f32 -1.45660715e-05, %v794_v19  ;;  %v551_v34 = vpop.f32.mrb[11].mxu0 }
 0x22a   :  { %v350_v35 = vadd.f32 -0.0073733293, %v345_v18  ;;  %v276_v37 = vmul.f32 %v271_v25, %v784_v6  ;;  %v336_v30 = vmul.f32 %v331_v26, %v784_v6  ;;  %v272_v39 = vadd.f32 2.7706815e-08, %v267_v27 }
 0x22b   :  { %v299_v42 = vadd.f32 -0.00073499064, %v294_v28  ;;  %v359_v43 = vadd.f32 -0.014264739, %v354_v29  ;;  %v295_v44 = vmul.f32 %v290_v31, %v766_v45  ;;  %v332_v47 = vadd.f32 -0.00021337405, %v327_v33 }
 0x22c   :  { %v355_v48 = vmul.f32 %v350_v35, %v766_v45  ;;  %v281_v49 = vadd.f32 -2.101024e-06, %v276_v37  ;;  %v341_v50 = vadd.f32 -0.001682827, %v336_v30  ;;  %v277_v51 = vmul.f32 %v272_v39, %v794_v19 }
 0x22d   :  { %v304_v53 = vmul.f32 %v299_v42, %v758_v40  ;;  %586 = vrcp.f32 %v359_v43  ;;  %v300_v54 = vadd.f32 -0.00073499064, %v295_v44  ;;  %v337_v55 = vmul.f32 %v332_v47, %v794_v19 }
 0x22e   :  { %v360_v56 = vadd.f32 -0.014264739, %v355_v48  ;;  %v286_v57 = vmul.f32 %v281_v49, %v784_v6  ;;  %v346_v58 = vmul.f32 %v341_v50, %v784_v6  ;;  %v282_v59 = vadd.f32 -2.101024e-06, %v277_v51 }
 0x22f   :  { %v309_v61 = vadd.f32 -0.0029546, %v304_v53  ;;  %v305_v62 = vmul.f32 %v300_v54, %v766_v45  ;;  %v342_v63 = vadd.f32 -0.001682827, %v337_v55  ;;  %v248_v3 = vmul.f32 0.70710677, %v797_v23 }
 0x230   :  { %588 = vrcp.f32 %v360_v56  ;;  %v291_v4 = vadd.f32 -5.6925062e-05, %v286_v57  ;;  %v351_v9 = vadd.f32 -0.0073733293, %v346_v58  ;;  %v287_v11 = vmul.f32 %v282_v59, %v794_v19 }
 0x231   :  { %v314_v12 = vmul.f32 %v309_v61, %v758_v40  ;;  %v310_v13 = vadd.f32 -0.0029546, %v305_v62  ;;  %v347_v14 = vmul.f32 %v342_v63, %v794_v19  ;;  %v818_v15 = vclamps-f32 %v248_v3, 4.0 }
 0x232   :  { %v296_v16 = vmul.f32 %v291_v4, %v784_v6  ;;  %v356_v17 = vmul.f32 %v351_v9, %v784_v6  ;;  %v292_v20 = vadd.f32 -5.6925062e-05, %v287_v11  ;;  %v239_v58 = vmul.f32 0.5, %v748_v32 }
 0x233   :  { %v319_v21 = vadd.f32 -0.016096033, %v314_v12  ;;  %v315_v22 = vmul.f32 %v310_v13, %v766_v45  ;;  %v352_v24 = vadd.f32 -0.0073733293, %v347_v14  ;;  %v825_v18 = vmul.f32 %v818_v15, %v818_v15 }
 0x234   :  { %v301_v25 = vadd.f32 -0.00073499064, %v296_v16  ;;  %v361_v40 = vadd.f32 -0.014264739, %v356_v17  ;;  %v297_v26 = vmul.f32 %v292_v20, %v794_v19  ;;  %v240_v59 = vmul.f32 0.5, %v751_v36 }
 0x235   :  { %v364_v27 = vmul.f32 %v753_v38, %v319_v21  ;;  %v320_v28 = vadd.f32 -0.016096033, %v315_v22  ;;  %v357_v29 = vmul.f32 %v352_v24, %v794_v19  ;;  %v268_v31 = vmul.f32 -2.7261424e-10, %v825_v18 }
 0x236   :  { %v306_v33 = vmul.f32 %v301_v25, %v784_v6  ;;  %590 = vrcp.f32 %v361_v40  ;;  %v302_v45 = vadd.f32 -0.00073499064, %v297_v26  ;;  %v328_v34 = vmul.f32 -1.45660715e-05, %v825_v18 }
 0x237   :  { %v587_v35 = vpop.eup %586  ;;  %v365_v37 = vmul.f32 %v760_v41, %v320_v28  ;;  %v362_v30 = vadd.f32 -0.014264739, %v357_v29  ;;  %v273_v39 = vadd.f32 2.7706815e-08, %v268_v31  ;;  %v242_v25 = vmul.f32 0.5, %v771_v52 }
 0x238   :  { %v374_v42 = vmul.f32 %v587_v35, %v364_v27  ;;  %v311_v43 = vadd.f32 -0.0029546, %v306_v33  ;;  %v307_v38 = vmul.f32 %v302_v45, %v794_v19  ;;  %v333_v44 = vadd.f32 -0.00021337405, %v328_v34 }
 0x239   :  { %592 = vrcp.f32 %v362_v30  ;;  %v278_v47 = vmul.f32 %v273_v39, %v825_v18  ;;  %v243_v52 = vmul.f32 0.5, %v797_v23 }
 0x23a   :  { %v589_v48 = vpop.eup %588  ;;  %v316_v49 = vmul.f32 %v311_v43, %v784_v6  ;;  %v312_v50 = vadd.f32 -0.0029546, %v307_v38  ;;  %v338_v51 = vmul.f32 %v333_v44, %v825_v18  ;;  %v379_v53 = vadd.f32 1.0, %v374_v42 }
 0x23b   :  { %v375_v54 = vmul.f32 %v589_v48, %v365_v37  ;;  %v283_v55 = vadd.f32 -2.101024e-06, %v278_v47 }
 0x23c   :  { %v321_v41 = vadd.f32 -0.016096033, %v316_v49  ;;  %v317_v56 = vmul.f32 %v312_v50, %v794_v19  ;;  %v343_v57 = vadd.f32 -0.001682827, %v338_v51  ;;  %v384_v4 = vmul.f32 %v379_v53, %v239_v58 }
 0x23d   :  { %v380_v61 = vadd.f32 1.0, %v375_v54  ;;  %v288_v62 = vmul.f32 %v283_v55, %v825_v18 }
 0x23e   :  { %v366_v63 = vmul.f32 %v777_v60, %v321_v41  ;;  %v322_v6 = vadd.f32 -0.016096033, %v317_v56  ;;  %v348_v3 = vmul.f32 %v343_v57, %v825_v18 }
 0x23f   :  { %v385_v9 = vmul.f32 %v380_v61, %v240_v59  ;;  %v293_v11 = vadd.f32 -5.6925062e-05, %v288_v62 }
 0x240   :  { %v591_v12 = vpop.eup %590  ;;  %v367_v13 = vmul.f32 %v786_v7, %v322_v6  ;;  %v353_v19 = vadd.f32 -0.0073733293, %v348_v3  ;;  %v241_v7 = vmul.f32 0.5, %v768_v46 }
 0x241   :  { %v389_v14 = vpack.c.bf16 %v385_v9, %v384_v4  ;;  %v376_v16 = vmul.f32 %v591_v12, %v366_v63  ;;  %v298_v32 = vmul.f32 %v293_v11, %v825_v18 }
 0x242   :  { %v358_v36 = vmul.f32 %v353_v19, %v825_v18 }
 0x243   :  { %v593_v17 = vpop.eup %592  ;;  %v303_v20 = vadd.f32 -0.00073499064, %v298_v32  ;;  %557 = vmatmul.mubr.msk.bf16.vlgmr.msra.gmra.mrb[0].mxu1 %vm413_vm3, %v389_v14  ;;  %v381_v60 = vadd.f32 1.0, %v376_v16 }
 0x244   :  { %v377_v21 = vmul.f32 %v593_v17, %v367_v13  ;;  %v363_v22 = vadd.f32 -0.014264739, %v358_v36  ;;  %560 = vmatprep.mubr.msk.bf16.mxu1 %vm597_vm2, %v596_v10 }
 0x245   :  { %v308_v24 = vmul.f32 %v303_v20, %v825_v18  ;;  %v386_v27 = vmul.f32 %v381_v60, %v241_v7 }
 0x246   :  { %v382_v40 = vadd.f32 1.0, %v377_v21  ;;  %594 = vrcp.f32 %v363_v22 }
 0x247   :  { %v313_v26 = vadd.f32 -0.0029546, %v308_v24 }
 0x248   :  { %v387_v28 = vmul.f32 %v382_v40, %v242_v25 }
 0x249   :  { %v318_v29 = vmul.f32 %v313_v26, %v825_v18  ;;  %v514_v18 = vld [vmem:[%s894_s6] ss:$0 sm:$0xff] }
 0x24a   :  { %v390_v31 = vpack.c.bf16 %v387_v28, %v386_v27 }
 0x24b   :  { %v323_v33 = vadd.f32 -0.016096033, %v318_v29 }
 0x24c   :  { %561 = vmatmul.mubr.msk.bf16.gmra.mrb[4].mxu1 %vm413_vm3, %v390_v31 }
 0x24d   :  { %v368_v45 = vmul.f32 %v818_v15, %v323_v33  ;;  %564 = vmatprep.mubr.msk.bf16.mxu1 %vm597_vm2, %v596_v10 }
 0x250   :  { %v595_v34 = vpop.eup %594 }
 0x251   :  { %v378_v46 = vmul.f32 %v595_v34, %v368_v45 }
 0x253   :  { %v383_v35 = vadd.f32 1.0, %v378_v46 }
 0x255   :  { %v388_v37 = vmul.f32 %v383_v35, %v243_v52 }
 0x257   :  { %v391_v30 = vpack.c.bf16 %v388_v37, %v388_v37 }
 0x259   :  { %565 = vmatmul.mubr.msk.bf16.gmra.mrb[8].mxu1 %vm413_vm3, %v391_v30 }
 0x316   :  { %v463_v39 = vpop.f32.mrb[0].mxu1 }
 0x317   :  { %v464_v42 = vadd.f32 %v514_v18, %v463_v39  ;;  %v558_v43 = vpop.f32.mrb[1].mxu1 }
 0x318   :  { %v466_v15 = vpop.f32.mrb[2].mxu1 }
 0x319   :  { %v485_v38 = vadd.f32 %v464_v42, %v641_v0  ;;  %v467_v10 = vadd.f32 %v514_v18, %v466_v15  ;;  %v559_v44 = vpop.f32.mrb[3].mxu1 }
 0x31b   :  { %490 = vst.msk [vmem:[%s895_s7] sm:$0xff] %vm34_vm0, %v485_v38  ;;  %v486_v23 = vadd.f32 %v467_v10, %v651_v2 }
 0x31d   :  { %491 = vst.msk [vmem:[%s895_s7 + $0x8] sm:$0xff] %vm34_vm0, %v486_v23 }
 0x31f   :  { %v471_v47 = vpop.f32.mrb[4].mxu1 }
 0x320   :  { %v472_v48 = vadd.f32 %v514_v18, %v471_v47  ;;  %v562_v49 = vpop.f32.mrb[5].mxu1 }
 0x321   :  { %v474_v50 = vpop.f32.mrb[6].mxu1 }
 0x322   :  { %v487_v0 = vadd.f32 %v472_v48, %v646_v1  ;;  %v475_v51 = vadd.f32 %v514_v18, %v474_v50  ;;  %v563_v53 = vpop.f32.mrb[7].mxu1 }
 0x324   :  { %492 = vst.msk [vmem:[%s895_s7 + $0x10] sm:$0xff] %vm34_vm0, %v487_v0  ;;  %v488_v2 = vadd.f32 %v475_v51, %v660_v5 }
 0x326   :  { %493 = vst.msk [vmem:[%s895_s7 + $0x18] sm:$0xff] %vm34_vm0, %v488_v2 }
 0x32c   :  { %v479_v54 = vpop.f32.mrb[8].mxu1 }
 0x32d   :  { %v480_v55 = vadd.f32 %v514_v18, %v479_v54  ;;  %v566_v41 = vpop.f32.mrb[9].mxu1 }
 0x32e   :  { %v482_v56 = vpop.f32.mrb[10].mxu1 }
 0x32f   :  { %v489_v1 = vadd.f32 %v480_v55, %v669_v8  ;;  %v567_v57 = vpop.f32.mrb[11].mxu1 }
 0x331   :  { %494 = vst.msk [vmem:[%s895_s7 + $0x20] sm:$0x3] %vm47_vm1, %v489_v1 }

</bundles_post_ra>
